<compile_context>
chip_gen: v7x
topology: tpu7x:2x2x1
jax: 0.10.0
libtpu: 0.0.40
codegen_flags: <defaults>
</compile_context>

<pallas_src>
import functools

import jax
import jax.numpy as jnp
import numpy as np
from jax import lax
from jax.experimental import pallas as pl
from jax.experimental.pallas import tpu as pltpu


# ----------------------------------------------------------------------------
# Kernel: one program per batch shard; whole shard resident in VMEM; serial
# time recurrence in-kernel.
# ----------------------------------------------------------------------------
def multiregressor_kernel(
    u_ref, eps_ref, u0_ref,
    gW0_ref, gb0_ref, gW1_ref, gb1_ref,                          # Latent g (hidden)
    gW2m_ref, gb2m_ref, gW2v_ref, gb2v_ref,                      # Latent g heads
    fW0z_ref, fW0u_ref, fb0_ref, fW1_ref, fb1_ref, fW2_ref, fb2_ref,  # ODE f
    hW0_ref, hb0_ref, hW1_ref, hb1_ref, hW2_ref, hb2_ref,        # Predictor h
    y_ref, s_ref, mean_ref, logvar_ref,
    ucontrib_scr, states_scr,
    *, step_h, n_substeps,
):
    act = jnp.tanh  # config['activation'] == 'tanh'
    T, Ns, _ = u_ref.shape
    n_states = eps_ref.shape[-1]
    n_hidden = fW1_ref.shape[0]

    def dot(a, b):
        return jnp.dot(a, b, preferred_element_type=jnp.float32)

    # ---- tiny weights/biases hoisted out of all loops ------------------------
    gW0, gb0 = gW0_ref[...], gb0_ref[...]
    gW1, gb1 = gW1_ref[...], gb1_ref[...]
    gW2m, gb2m = gW2m_ref[...], gb2m_ref[...]
    gW2v, gb2v = gW2v_ref[...], gb2v_ref[...]
    fW0z, fW0u, fb0 = fW0z_ref[...], fW0u_ref[...], fb0_ref[...]
    fW1, fb1 = fW1_ref[...], fb1_ref[...]
    fW2, fb2 = fW2_ref[...], fb2_ref[...]
    hW0, hb0 = hW0_ref[...], hb0_ref[...]
    hW1, hb1 = hW1_ref[...], hb1_ref[...]
    hW2, hb2 = hW2_ref[...], hb2_ref[...]

    # ---- sample(): z0 from Latent(g) on u0, reparameterized ------------------
    # gW2/gb2 pre-split in the wrapper -> no lane slices here.
    hg = act(dot(u0_ref[...], gW0) + gb0)
    hg = act(dot(hg, gW1) + gb1)
    mean = dot(hg, gW2m) + gb2m
    logvar = dot(hg, gW2v) + gb2v
    z0 = mean + jnp.exp(logvar * 0.5) * eps_ref[...]
    mean_ref[...] = mean
    logvar_ref[...] = logvar

    # ---- hoisted u-contribution of the first ODE layer (off the serial path) -
    # One batched matmul over all T steps; the recurrence only indexes the result.
    u_all = u_ref[...].reshape(T * Ns, u_ref.shape[-1])
    ucontrib_scr[...] = (dot(u_all, fW0u) + fb0).reshape(T, Ns, n_hidden)

    # ---- loop-invariant bias broadcasts hoisted off the serial chain ----------
    fb1_b = jnp.broadcast_to(fb1, (Ns, n_hidden))
    fb2_b = jnp.broadcast_to(fb2, (Ns, n_states))

    # ---- serial time loop: Euler substeps; z is the loop carry ----------------
    def time_step(t, z):
        u_contrib = ucontrib_scr[t]                               # [Ns, nh]
        for _ in range(n_substeps):                               # static, dt / h
            h1 = act(dot(z, fW0z) + u_contrib)
            h2 = act(dot(h1, fW1) + fb1_b)
            z = z + step_h * (dot(h2, fW2) + fb2_b)
        states_scr[t] = z                                         # VMEM scratch store
        return z

    lax.fori_loop(0, T, time_step, z0, unroll=min(T, 8))

    # ---- Predictor h off the serial path: one batched [T*Ns, ns] pass ---------
    states = states_scr[...]                                      # [T, Ns, ns]
    hy = act(dot(states.reshape(T * Ns, n_states), hW0) + hb0)
    hy = act(dot(hy, hW1) + hb1)
    y = dot(hy, hW2) + hb2                                        # [T*Ns, no]

    # Single write-out; ref shapes may be the lane-dense packed [1, rows, 128]
    # slabs or the natural [T, Ns, feat] layout (wrapper decides).
    y_ref[...] = y.reshape(y_ref.shape)
    s_ref[...] = states.reshape(s_ref.shape)


# ----------------------------------------------------------------------------
# pallas_call builder (packed or natural output layout)
# ----------------------------------------------------------------------------
def _pallas_forward(u, eps, u0, weights, *, n_states, n_outputs, n_hidden,
                    step_size, n_substeps, batch_shards, packed):
    T, N, n_ufeat = u.shape
    Ns = N // batch_shards
    n_inputs = u0.shape[-1]

    def full_spec(a):
        return pl.BlockSpec(a.shape, lambda b, _nd=a.ndim: (0,) * _nd)

    in_specs = [
        pl.BlockSpec((T, Ns, n_ufeat), lambda b: (0, b, 0)),      # u
        pl.BlockSpec((Ns, n_states), lambda b: (b, 0)),           # eps
        pl.BlockSpec((Ns, n_inputs), lambda b: (b, 0)),           # u0
    ] + [full_spec(w) for w in weights]

    if packed:
        y_rows = (T * Ns * n_outputs) // 128
        s_rows = (T * Ns * n_states) // 128
        y_shape = jax.ShapeDtypeStruct((batch_shards, y_rows, 128), jnp.float32)
        s_shape = jax.ShapeDtypeStruct((batch_shards, s_rows, 128), jnp.float32)
        y_spec = pl.BlockSpec((1, y_rows, 128), lambda b: (b, 0, 0))
        s_spec = pl.BlockSpec((1, s_rows, 128), lambda b: (b, 0, 0))
    else:
        y_shape = jax.ShapeDtypeStruct((T, N, n_outputs), jnp.float32)
        s_shape = jax.ShapeDtypeStruct((T, N, n_states), jnp.float32)
        y_spec = pl.BlockSpec((T, Ns, n_outputs), lambda b: (0, b, 0))
        s_spec = pl.BlockSpec((T, Ns, n_states), lambda b: (0, b, 0))

    m_shape = jax.ShapeDtypeStruct((N, n_states), jnp.float32)
    m_spec = pl.BlockSpec((Ns, n_states), lambda b: (b, 0))

    grid_spec = pltpu.PrefetchScalarGridSpec(
        num_scalar_prefetch=0,
        grid=(batch_shards,),
        in_specs=in_specs,
        out_specs=[y_spec, s_spec, m_spec, m_spec],
        scratch_shapes=[
            pltpu.VMEM((T, Ns, n_hidden), jnp.float32),           # hoisted u-contrib
            pltpu.VMEM((T, Ns, n_states), jnp.float32),           # states accumulator
        ],
    )

    kernel = functools.partial(
        multiregressor_kernel, step_h=float(step_size), n_substeps=n_substeps)

    y_raw, s_raw, qm, qlv = pl.pallas_call(
        kernel,
        out_shape=(y_shape, s_shape, m_shape, m_shape),
        grid_spec=grid_spec,
        compiler_params=pltpu.CompilerParams(
            dimension_semantics=("parallel",),                    # v7x: one shard per TC
            vmem_limit_bytes=32 * 1024 * 1024),
    )(u, eps, u0, *weights)

    if packed:
        y_pred = (y_raw.reshape(batch_shards, T, Ns, n_outputs)
                  .transpose(1, 0, 2, 3).reshape(T, N, n_outputs))
        states = (s_raw.reshape(batch_shards, T, Ns, n_states)
                  .transpose(1, 0, 2, 3).reshape(T, N, n_states))
    else:
        y_pred, states = y_raw, s_raw
    return y_pred, states, (qm, qlv)


# ----------------------------------------------------------------------------
# Wrapper
# ----------------------------------------------------------------------------
def multiregressor_forward(u, eps, params, *, n_inputs, n_states, n_outputs,
                           dt=0.05, step_size=0.05, batch_shards=1,
                           pack_outputs=True):
    T, N, _ = u.shape
    assert N % batch_shards == 0, "batch must split evenly across shards"
    Ns = N // batch_shards
    if batch_shards > 1:
        assert Ns % 8 == 0, "per-shard batch must stay sublane (8) aligned"
    n_sub = max(1, int(round(dt / step_size)))
    n_hidden = params["fW1"].shape[0]

    # Lane-axis slices done on the wrapper side (free) instead of in-kernel.
    u0 = u[0, :, :n_inputs]                                       # [N, ni]
    fW0, gW2, gb2 = params["fW0"], params["gW2"], params["gb2"]
    weights = [
        # Latent g (hidden layers + split mean/logvar heads)
        params["gW0"], params["gb0"], params["gW1"], params["gb1"],
        gW2[:, :n_states], gb2[:, :n_states],
        gW2[:, n_states:], gb2[:, n_states:],
        # NeuralODE f (fW0 split: rows [:ns] hit z, rows [ns:] hit u_t)
        fW0[:n_states], fW0[n_states:], params["fb0"],
        params["fW1"], params["fb1"], params["fW2"], params["fb2"],
        # Predictor h
        params["hW0"], params["hb0"], params["hW1"], params["hb1"],
        params["hW2"], params["hb2"],
    ]

    common = dict(n_states=n_states, n_outputs=n_outputs, n_hidden=n_hidden,
                  step_size=step_size, n_substeps=n_sub, batch_shards=batch_shards)

    can_pack = (pack_outputs
                and (T * Ns * n_outputs) % 128 == 0
                and (T * Ns * n_states) % 128 == 0)
    if can_pack:
        try:
            out = _pallas_forward(u, eps, u0, weights, packed=True, **common)
            jax.block_until_ready(out)
            return out
        except Exception:
            # Lane-dense packing relies on a minor-dim reshape inside the kernel;
            # if this Mosaic build rejects that relayout, fall back to the natural
            # (correct, slightly less writeback-efficient) layout.
            pass
    return _pallas_forward(u, eps, u0, weights, packed=False, **common)


# ----------------------------------------------------------------------------
# Deterministic parameter init (synthetic; no checkpoint load)
# ----------------------------------------------------------------------------
def init_params(key, *, n_inputs, n_states, n_hidden, n_outputs):
    def linear(k, d_in, d_out, scale=None):
        kw, kb = jax.random.split(k)
        s = scale if scale is not None else 1.0 / np.sqrt(d_in)
        W = jax.random.uniform(kw, (d_in, d_out), jnp.float32, -s, s)
        b = jax.random.uniform(kb, (1, d_out), jnp.float32, -s, s)
        return W, b

    ks = jax.random.split(key, 9)
    p = {}
    # Latent g: ni -> nh -> nh -> 2*ns
    p["gW0"], p["gb0"] = linear(ks[0], n_inputs, n_hidden)
    p["gW1"], p["gb1"] = linear(ks[1], n_hidden, n_hidden)
    p["gW2"], p["gb2"] = linear(ks[2], n_hidden, 2 * n_states)
    # NeuralODE f: (ns + 2*ni) -> nh -> nh -> ns
    p["fW0"], p["fb0"] = linear(ks[3], n_states + 2 * n_inputs, n_hidden)
    p["fW1"], p["fb1"] = linear(ks[4], n_hidden, n_hidden)
    # TODO(synk): stability_init in the original NeuralODE is unspecified; use a
    # small-scale deterministic init on the output layer as a stand-in.
    p["fW2"], p["fb2"] = linear(ks[5], n_hidden, n_states, scale=0.05)
    # Predictor h: ns -> nh -> nh -> no
    p["hW0"], p["hb0"] = linear(ks[6], n_states, n_hidden)
    p["hW1"], p["hb1"] = linear(ks[7], n_hidden, n_hidden)
    p["hW2"], p["hb2"] = linear(ks[8], n_hidden, n_outputs)
    return p


# ----------------------------------------------------------------------------
# Pure-JAX reference for a correctness sanity check
# ----------------------------------------------------------------------------
def reference_forward(u, eps, p, *, n_inputs, n_states, dt, step_size):
    act = jnp.tanh

    def mlp3(x, a, b, c, d, e, f):
        h = act(x @ a + b)
        h = act(h @ c + d)
        return h @ e + f

    out = mlp3(u[0, :, :n_inputs], p["gW0"], p["gb0"], p["gW1"], p["gb1"], p["gW2"], p["gb2"])
    mean, logvar = out[:, :n_states], out[:, n_states:]
    z = mean + jnp.exp(logvar * 0.5) * eps
    n_sub = max(1, int(round(dt / step_size)))
    states = []
    for t in range(u.shape[0]):
        for _ in range(n_sub):
            x = jnp.concatenate([z, u[t]], axis=-1)
            z = z + step_size * mlp3(x, p["fW0"], p["fb0"], p["fW1"], p["fb1"], p["fW2"], p["fb2"])
        states.append(z)
    states = jnp.stack(states, axis=0)
    y = mlp3(states, p["hW0"], p["hb0"], p["hW1"], p["hb1"], p["hW2"], p["hb2"])
    return y, states, (mean, logvar)


if __name__ == "__main__":
    config = dict(n_inputs=4, n_latent=8, n_outputs=4, n_hidden=32, n_layers=2,
                  ode_solver="euler", step_size=0.05, stability_init=True,
                  activation="tanh")
    T, N = 8, 16
    dt = 0.05
    ni, ns, no, nh = config["n_inputs"], config["n_latent"], config["n_outputs"], config["n_hidden"]

    key = jax.random.PRNGKey(0)
    k_u, k_eps, k_p = jax.random.split(key, 3)
    u = jax.random.normal(k_u, (T, N, 2 * ni), dtype=jnp.float32)     # [T, N, n_inputs*2]
    eps = jax.random.normal(k_eps, (N, ns), dtype=jnp.float32)        # reparameterization noise
    params = init_params(k_p, n_inputs=ni, n_states=ns, n_hidden=nh, n_outputs=no)

    # batch_shards=2 exercises the "parallel" grid axis (both TCs on v7x; harmless
    # sequential grid on v5e/v6e).
    y_pred, states, (qm, qlv) = multiregressor_forward(
        u, eps, params, n_inputs=ni, n_states=ns, n_outputs=no,
        dt=dt, step_size=config["step_size"], batch_shards=2)
    jax.block_until_ready((y_pred, states, qm, qlv))

    y_ref, s_ref, (m_ref, lv_ref) = reference_forward(
        u, eps, params, n_inputs=ni, n_states=ns, dt=dt, step_size=config["step_size"])

    assert np.allclose(np.asarray(y_pred), np.asarray(y_ref), atol=1e-4, rtol=1e-4)
    assert np.allclose(np.asarray(states), np.asarray(s_ref), atol=1e-4, rtol=1e-4)
    assert np.allclose(np.asarray(qm), np.asarray(m_ref), atol=1e-4, rtol=1e-4)
    assert np.allclose(np.asarray(qlv), np.asarray(lv_ref), atol=1e-4, rtol=1e-4)

    print("KERNEL_OK")
</pallas_src>

<mosaic_0001>
module attributes {stable_mosaic.version = 11 : i64} {
  func.func @multiregressor_kernel(%arg0: i32, %arg1: memref<8x8x8xf32, #tpu.memory_space<vmem>>, %arg2: memref<8x8xf32, #tpu.memory_space<vmem>>, %arg3: memref<8x4xf32, #tpu.memory_space<vmem>>, %arg4: memref<4x32xf32, #tpu.memory_space<vmem>>, %arg5: memref<1x32xf32, #tpu.memory_space<vmem>>, %arg6: memref<32x32xf32, #tpu.memory_space<vmem>>, %arg7: memref<1x32xf32, #tpu.memory_space<vmem>>, %arg8: memref<32x8xf32, #tpu.memory_space<vmem>>, %arg9: memref<1x8xf32, #tpu.memory_space<vmem>>, %arg10: memref<32x8xf32, #tpu.memory_space<vmem>>, %arg11: memref<1x8xf32, #tpu.memory_space<vmem>>, %arg12: memref<8x32xf32, #tpu.memory_space<vmem>>, %arg13: memref<8x32xf32, #tpu.memory_space<vmem>>, %arg14: memref<1x32xf32, #tpu.memory_space<vmem>>, %arg15: memref<32x32xf32, #tpu.memory_space<vmem>>, %arg16: memref<1x32xf32, #tpu.memory_space<vmem>>, %arg17: memref<32x8xf32, #tpu.memory_space<vmem>>, %arg18: memref<1x8xf32, #tpu.memory_space<vmem>>, %arg19: memref<8x32xf32, #tpu.memory_space<vmem>>, %arg20: memref<1x32xf32, #tpu.memory_space<vmem>>, %arg21: memref<32x32xf32, #tpu.memory_space<vmem>>, %arg22: memref<1x32xf32, #tpu.memory_space<vmem>>, %arg23: memref<32x4xf32, #tpu.memory_space<vmem>>, %arg24: memref<1x4xf32, #tpu.memory_space<vmem>>, %arg25: memref<1x2x128xf32, #tpu.memory_space<vmem>>, %arg26: memref<1x4x128xf32, #tpu.memory_space<vmem>>, %arg27: memref<8x8xf32, #tpu.memory_space<vmem>>, %arg28: memref<8x8xf32, #tpu.memory_space<vmem>>, %arg29: memref<8x8x32xf32, #tpu.memory_space<vmem>>, %arg30: memref<8x8x8xf32, #tpu.memory_space<vmem>>) attributes {dimension_semantics = [#tpu.dimension_semantics<parallel>], iteration_bounds = array<i64: 2>, scalar_prefetch = 0 : i64, scratch_operands = 2 : i64, tpu.core_type = #tpu.core_type<tc>, window_params = [{transform_indices = @transform_0, window_bounds = array<i64: 8, 8, 8>}, {transform_indices = @transform_1, window_bounds = array<i64: 8, 8>}, {transform_indices = @transform_2, window_bounds = array<i64: 8, 4>}, {pipeline_mode = #tpu.pipeline_mode<synchronous>, transform_indices = @transform_3, window_bounds = array<i64: 4, 32>}, {pipeline_mode = #tpu.pipeline_mode<synchronous>, transform_indices = @transform_4, window_bounds = array<i64: 1, 32>}, {pipeline_mode = #tpu.pipeline_mode<synchronous>, transform_indices = @transform_5, window_bounds = array<i64: 32, 32>}, {pipeline_mode = #tpu.pipeline_mode<synchronous>, transform_indices = @transform_6, window_bounds = array<i64: 1, 32>}, {pipeline_mode = #tpu.pipeline_mode<synchronous>, transform_indices = @transform_7, window_bounds = array<i64: 32, 8>}, {pipeline_mode = #tpu.pipeline_mode<synchronous>, transform_indices = @transform_8, window_bounds = array<i64: 1, 8>}, {pipeline_mode = #tpu.pipeline_mode<synchronous>, transform_indices = @transform_9, window_bounds = array<i64: 32, 8>}, {pipeline_mode = #tpu.pipeline_mode<synchronous>, transform_indices = @transform_10, window_bounds = array<i64: 1, 8>}, {pipeline_mode = #tpu.pipeline_mode<synchronous>, transform_indices = @transform_11, window_bounds = array<i64: 8, 32>}, {pipeline_mode = #tpu.pipeline_mode<synchronous>, transform_indices = @transform_12, window_bounds = array<i64: 8, 32>}, {pipeline_mode = #tpu.pipeline_mode<synchronous>, transform_indices = @transform_13, window_bounds = array<i64: 1, 32>}, {pipeline_mode = #tpu.pipeline_mode<synchronous>, transform_indices = @transform_14, window_bounds = array<i64: 32, 32>}, {pipeline_mode = #tpu.pipeline_mode<synchronous>, transform_indices = @transform_15, window_bounds = array<i64: 1, 32>}, {pipeline_mode = #tpu.pipeline_mode<synchronous>, transform_indices = @transform_16, window_bounds = array<i64: 32, 8>}, {pipeline_mode = #tpu.pipeline_mode<synchronous>, transform_indices = @transform_17, window_bounds = array<i64: 1, 8>}, {pipeline_mode = #tpu.pipeline_mode<synchronous>, transform_indices = @transform_18, window_bounds = array<i64: 8, 32>}, {pipeline_mode = #tpu.pipeline_mode<synchronous>, transform_indices = @transform_19, window_bounds = array<i64: 1, 32>}, {pipeline_mode = #tpu.pipeline_mode<synchronous>, transform_indices = @transform_20, window_bounds = array<i64: 32, 32>}, {pipeline_mode = #tpu.pipeline_mode<synchronous>, transform_indices = @transform_21, window_bounds = array<i64: 1, 32>}, {pipeline_mode = #tpu.pipeline_mode<synchronous>, transform_indices = @transform_22, window_bounds = array<i64: 32, 4>}, {pipeline_mode = #tpu.pipeline_mode<synchronous>, transform_indices = @transform_23, window_bounds = array<i64: 1, 4>}, {transform_indices = @transform_24, window_bounds = array<i64: 1, 2, 128>}, {transform_indices = @transform_25, window_bounds = array<i64: 1, 4, 128>}, {transform_indices = @transform_26, window_bounds = array<i64: 8, 8>}, {transform_indices = @transform_27, window_bounds = array<i64: 8, 8>}]} {
    %c0 = arith.constant 0 : index
    %c0_0 = arith.constant 0 : index
    %0 = vector.load %arg4[%c0, %c0_0] : memref<4x32xf32, #tpu.memory_space<vmem>>, vector<4x32xf32>
    %c0_1 = arith.constant 0 : index
    %c0_2 = arith.constant 0 : index
    %1 = vector.load %arg5[%c0_1, %c0_2] : memref<1x32xf32, #tpu.memory_space<vmem>>, vector<1x32xf32>
    %c0_3 = arith.constant 0 : index
    %c0_4 = arith.constant 0 : index
    %2 = vector.load %arg6[%c0_3, %c0_4] : memref<32x32xf32, #tpu.memory_space<vmem>>, vector<32x32xf32>
    %c0_5 = arith.constant 0 : index
    %c0_6 = arith.constant 0 : index
    %3 = vector.load %arg7[%c0_5, %c0_6] : memref<1x32xf32, #tpu.memory_space<vmem>>, vector<1x32xf32>
    %c0_7 = arith.constant 0 : index
    %c0_8 = arith.constant 0 : index
    %4 = vector.load %arg8[%c0_7, %c0_8] : memref<32x8xf32, #tpu.memory_space<vmem>>, vector<32x8xf32>
    %c0_9 = arith.constant 0 : index
    %c0_10 = arith.constant 0 : index
    %5 = vector.load %arg9[%c0_9, %c0_10] : memref<1x8xf32, #tpu.memory_space<vmem>>, vector<1x8xf32>
    %c0_11 = arith.constant 0 : index
    %c0_12 = arith.constant 0 : index
    %6 = vector.load %arg10[%c0_11, %c0_12] : memref<32x8xf32, #tpu.memory_space<vmem>>, vector<32x8xf32>
    %c0_13 = arith.constant 0 : index
    %c0_14 = arith.constant 0 : index
    %7 = vector.load %arg11[%c0_13, %c0_14] : memref<1x8xf32, #tpu.memory_space<vmem>>, vector<1x8xf32>
    %c0_15 = arith.constant 0 : index
    %c0_16 = arith.constant 0 : index
    %8 = vector.load %arg12[%c0_15, %c0_16] : memref<8x32xf32, #tpu.memory_space<vmem>>, vector<8x32xf32>
    %c0_17 = arith.constant 0 : index
    %c0_18 = arith.constant 0 : index
    %9 = vector.load %arg13[%c0_17, %c0_18] : memref<8x32xf32, #tpu.memory_space<vmem>>, vector<8x32xf32>
    %c0_19 = arith.constant 0 : index
    %c0_20 = arith.constant 0 : index
    %10 = vector.load %arg14[%c0_19, %c0_20] : memref<1x32xf32, #tpu.memory_space<vmem>>, vector<1x32xf32>
    %c0_21 = arith.constant 0 : index
    %c0_22 = arith.constant 0 : index
    %11 = vector.load %arg15[%c0_21, %c0_22] : memref<32x32xf32, #tpu.memory_space<vmem>>, vector<32x32xf32>
    %c0_23 = arith.constant 0 : index
    %c0_24 = arith.constant 0 : index
    %12 = vector.load %arg16[%c0_23, %c0_24] : memref<1x32xf32, #tpu.memory_space<vmem>>, vector<1x32xf32>
    %c0_25 = arith.constant 0 : index
    %c0_26 = arith.constant 0 : index
    %13 = vector.load %arg17[%c0_25, %c0_26] : memref<32x8xf32, #tpu.memory_space<vmem>>, vector<32x8xf32>
    %c0_27 = arith.constant 0 : index
    %c0_28 = arith.constant 0 : index
    %14 = vector.load %arg18[%c0_27, %c0_28] : memref<1x8xf32, #tpu.memory_space<vmem>>, vector<1x8xf32>
    %c0_29 = arith.constant 0 : index
    %c0_30 = arith.constant 0 : index
    %15 = vector.load %arg19[%c0_29, %c0_30] : memref<8x32xf32, #tpu.memory_space<vmem>>, vector<8x32xf32>
    %c0_31 = arith.constant 0 : index
    %c0_32 = arith.constant 0 : index
    %16 = vector.load %arg20[%c0_31, %c0_32] : memref<1x32xf32, #tpu.memory_space<vmem>>, vector<1x32xf32>
    %c0_33 = arith.constant 0 : index
    %c0_34 = arith.constant 0 : index
    %17 = vector.load %arg21[%c0_33, %c0_34] : memref<32x32xf32, #tpu.memory_space<vmem>>, vector<32x32xf32>
    %c0_35 = arith.constant 0 : index
    %c0_36 = arith.constant 0 : index
    %18 = vector.load %arg22[%c0_35, %c0_36] : memref<1x32xf32, #tpu.memory_space<vmem>>, vector<1x32xf32>
    %c0_37 = arith.constant 0 : index
    %c0_38 = arith.constant 0 : index
    %19 = vector.load %arg23[%c0_37, %c0_38] : memref<32x4xf32, #tpu.memory_space<vmem>>, vector<32x4xf32>
    %c0_39 = arith.constant 0 : index
    %c0_40 = arith.constant 0 : index
    %20 = vector.load %arg24[%c0_39, %c0_40] : memref<1x4xf32, #tpu.memory_space<vmem>>, vector<1x4xf32>
    %c0_41 = arith.constant 0 : index
    %c0_42 = arith.constant 0 : index
    %21 = vector.load %arg3[%c0_41, %c0_42] : memref<8x4xf32, #tpu.memory_space<vmem>>, vector<8x4xf32>
    %cst = arith.constant dense<0.000000e+00> : vector<8x32xf32>
    %22 = tpu.matmul %21, %0, %cst {dimension_numbers = #tpu.dot_dimension_numbers<[1], [0], [0], [1], [0, 0, 1, 1], [], []>} : vector<8x4xf32>, vector<4x32xf32>, vector<8x32xf32> -> vector<8x32xf32>
    %23 = vector.broadcast %1 : vector<1x32xf32> to vector<8x32xf32>
    %24 = arith.addf %22, %23 : vector<8x32xf32>
    %25 = math.tanh %24 : vector<8x32xf32>
    %cst_43 = arith.constant dense<0.000000e+00> : vector<8x32xf32>
    %26 = tpu.matmul %25, %2, %cst_43 {dimension_numbers = #tpu.dot_dimension_numbers<[1], [0], [0], [1], [0, 0, 1, 1], [], []>} : vector<8x32xf32>, vector<32x32xf32>, vector<8x32xf32> -> vector<8x32xf32>
    %27 = vector.broadcast %3 : vector<1x32xf32> to vector<8x32xf32>
    %28 = arith.addf %26, %27 : vector<8x32xf32>
    %29 = math.tanh %28 : vector<8x32xf32>
    %cst_44 = arith.constant dense<0.000000e+00> : vector<8x8xf32>
    %30 = tpu.matmul %29, %4, %cst_44 {dimension_numbers = #tpu.dot_dimension_numbers<[1], [0], [0], [1], [0, 0, 1, 1], [], []>} : vector<8x32xf32>, vector<32x8xf32>, vector<8x8xf32> -> vector<8x8xf32>
    %31 = vector.broadcast %5 : vector<1x8xf32> to vector<8x8xf32>
    %32 = arith.addf %30, %31 : vector<8x8xf32>
    %cst_45 = arith.constant dense<0.000000e+00> : vector<8x8xf32>
    %33 = tpu.matmul %29, %6, %cst_45 {dimension_numbers = #tpu.dot_dimension_numbers<[1], [0], [0], [1], [0, 0, 1, 1], [], []>} : vector<8x32xf32>, vector<32x8xf32>, vector<8x8xf32> -> vector<8x8xf32>
    %34 = vector.broadcast %7 : vector<1x8xf32> to vector<8x8xf32>
    %35 = arith.addf %33, %34 : vector<8x8xf32>
    %cst_46 = arith.constant 5.000000e-01 : f32
    %36 = vector.broadcast %cst_46 : f32 to vector<8x8xf32>
    %37 = arith.mulf %35, %36 : vector<8x8xf32>
    %38 = math.exp %37 : vector<8x8xf32>
    %c0_47 = arith.constant 0 : index
    %c0_48 = arith.constant 0 : index
    %39 = vector.load %arg2[%c0_47, %c0_48] : memref<8x8xf32, #tpu.memory_space<vmem>>, vector<8x8xf32>
    %40 = arith.mulf %38, %39 : vector<8x8xf32>
    %41 = arith.addf %32, %40 : vector<8x8xf32>
    %c0_49 = arith.constant 0 : index
    %c0_50 = arith.constant 0 : index
    %42 = vector.load %arg27[%c0_49, %c0_50] : memref<8x8xf32, #tpu.memory_space<vmem>>, vector<8x8xf32>
    tpu.vector_store %arg27[%c0_49, %c0_50], %32 {strides = array<i32>} : memref<8x8xf32, #tpu.memory_space<vmem>>, vector<8x8xf32>,
    %c0_51 = arith.constant 0 : index
    %c0_52 = arith.constant 0 : index
    %43 = vector.load %arg28[%c0_51, %c0_52] : memref<8x8xf32, #tpu.memory_space<vmem>>, vector<8x8xf32>
    tpu.vector_store %arg28[%c0_51, %c0_52], %35 {strides = array<i32>} : memref<8x8xf32, #tpu.memory_space<vmem>>, vector<8x8xf32>,
    %c0_53 = arith.constant 0 : index
    %c0_54 = arith.constant 0 : index
    %c0_55 = arith.constant 0 : index
    %44 = vector.load %arg1[%c0_53, %c0_54, %c0_55] : memref<8x8x8xf32, #tpu.memory_space<vmem>>, vector<8x8x8xf32>
    %45 = vector.shape_cast %44 : vector<8x8x8xf32> to vector<64x8xf32>
    %cst_56 = arith.constant dense<0.000000e+00> : vector<64x32xf32>
    %46 = tpu.matmul %45, %9, %cst_56 {dimension_numbers = #tpu.dot_dimension_numbers<[1], [0], [0], [1], [0, 0, 1, 1], [], []>} : vector<64x8xf32>, vector<8x32xf32>, vector<64x32xf32> -> vector<64x32xf32>
    %47 = vector.broadcast %10 : vector<1x32xf32> to vector<64x32xf32>
    %48 = arith.addf %46, %47 : vector<64x32xf32>
    %49 = vector.shape_cast %48 : vector<64x32xf32> to vector<8x8x32xf32>
    %c0_57 = arith.constant 0 : index
    %c0_58 = arith.constant 0 : index
    %c0_59 = arith.constant 0 : index
    %50 = vector.load %arg29[%c0_57, %c0_58, %c0_59] : memref<8x8x32xf32, #tpu.memory_space<vmem>>, vector<8x8x32xf32>
    tpu.vector_store %arg29[%c0_57, %c0_58, %c0_59], %49 {strides = array<i32>} : memref<8x8x32xf32, #tpu.memory_space<vmem>>, vector<8x8x32xf32>,
    %51 = vector.shape_cast %12 : vector<1x32xf32> to vector<1x32xf32>
    %52 = vector.broadcast %51 : vector<1x32xf32> to vector<8x32xf32>
    %53 = vector.shape_cast %14 : vector<1x8xf32> to vector<1x8xf32>
    %54 = vector.broadcast %53 : vector<1x8xf32> to vector<8x8xf32>
    %c0_i32 = arith.constant 0 : i32
    %55 = arith.index_cast %c0_i32 : i32 to index
    %c0_60 = arith.constant 0 : index
    %c0_61 = arith.constant 0 : index
    %56 = vector.load %arg29[%55, %c0_60, %c0_61] : memref<8x8x32xf32, #tpu.memory_space<vmem>>, vector<1x8x32xf32>
    %57 = vector.shape_cast %56 : vector<1x8x32xf32> to vector<8x32xf32>
    %cst_62 = arith.constant dense<0.000000e+00> : vector<8x32xf32>
    %58 = tpu.matmul %41, %8, %cst_62 {dimension_numbers = #tpu.dot_dimension_numbers<[1], [0], [0], [1], [0, 0, 1, 1], [], []>} : vector<8x8xf32>, vector<8x32xf32>, vector<8x32xf32> -> vector<8x32xf32>
    %59 = arith.addf %58, %57 : vector<8x32xf32>
    %60 = math.tanh %59 : vector<8x32xf32>
    %cst_63 = arith.constant dense<0.000000e+00> : vector<8x32xf32>
    %61 = tpu.matmul %60, %11, %cst_63 {dimension_numbers = #tpu.dot_dimension_numbers<[1], [0], [0], [1], [0, 0, 1, 1], [], []>} : vector<8x32xf32>, vector<32x32xf32>, vector<8x32xf32> -> vector<8x32xf32>
    %62 = arith.addf %61, %52 : vector<8x32xf32>
    %63 = math.tanh %62 : vector<8x32xf32>
    %cst_64 = arith.constant dense<0.000000e+00> : vector<8x8xf32>
    %64 = tpu.matmul %63, %13, %cst_64 {dimension_numbers = #tpu.dot_dimension_numbers<[1], [0], [0], [1], [0, 0, 1, 1], [], []>} : vector<8x32xf32>, vector<32x8xf32>, vector<8x8xf32> -> vector<8x8xf32>
    %65 = arith.addf %64, %54 : vector<8x8xf32>
    %cst_65 = arith.constant 5.000000e-02 : f32
    %66 = vector.broadcast %cst_65 : f32 to vector<8x8xf32>
    %67 = arith.mulf %66, %65 : vector<8x8xf32>
    %68 = arith.addf %41, %67 : vector<8x8xf32>
    %69 = arith.index_cast %c0_i32 : i32 to index
    %c0_66 = arith.constant 0 : index
    %c0_67 = arith.constant 0 : index
    %70 = vector.load %arg30[%69, %c0_66, %c0_67] : memref<8x8x8xf32, #tpu.memory_space<vmem>>, vector<1x8x8xf32>
    %71 = vector.shape_cast %70 : vector<1x8x8xf32> to vector<8x8xf32>
    %72 = vector.shape_cast %68 : vector<8x8xf32> to vector<1x8x8xf32>
    tpu.vector_store %arg30[%69, %c0_66, %c0_67], %72 {strides = array<i32>} : memref<8x8x8xf32, #tpu.memory_space<vmem>>, vector<1x8x8xf32>,
    %c1_i32 = arith.constant 1 : i32
    %73 = arith.index_cast %c1_i32 : i32 to index
    %c0_68 = arith.constant 0 : index
    %c0_69 = arith.constant 0 : index
    %74 = vector.load %arg29[%73, %c0_68, %c0_69] : memref<8x8x32xf32, #tpu.memory_space<vmem>>, vector<1x8x32xf32>
    %75 = vector.shape_cast %74 : vector<1x8x32xf32> to vector<8x32xf32>
    %cst_70 = arith.constant dense<0.000000e+00> : vector<8x32xf32>
    %76 = tpu.matmul %68, %8, %cst_70 {dimension_numbers = #tpu.dot_dimension_numbers<[1], [0], [0], [1], [0, 0, 1, 1], [], []>} : vector<8x8xf32>, vector<8x32xf32>, vector<8x32xf32> -> vector<8x32xf32>
    %77 = arith.addf %76, %75 : vector<8x32xf32>
    %78 = math.tanh %77 : vector<8x32xf32>
    %cst_71 = arith.constant dense<0.000000e+00> : vector<8x32xf32>
    %79 = tpu.matmul %78, %11, %cst_71 {dimension_numbers = #tpu.dot_dimension_numbers<[1], [0], [0], [1], [0, 0, 1, 1], [], []>} : vector<8x32xf32>, vector<32x32xf32>, vector<8x32xf32> -> vector<8x32xf32>
    %80 = arith.addf %79, %52 : vector<8x32xf32>
    %81 = math.tanh %80 : vector<8x32xf32>
    %cst_72 = arith.constant dense<0.000000e+00> : vector<8x8xf32>
    %82 = tpu.matmul %81, %13, %cst_72 {dimension_numbers = #tpu.dot_dimension_numbers<[1], [0], [0], [1], [0, 0, 1, 1], [], []>} : vector<8x32xf32>, vector<32x8xf32>, vector<8x8xf32> -> vector<8x8xf32>
    %83 = arith.addf %82, %54 : vector<8x8xf32>
    %cst_73 = arith.constant 5.000000e-02 : f32
    %84 = vector.broadcast %cst_73 : f32 to vector<8x8xf32>
    %85 = arith.mulf %84, %83 : vector<8x8xf32>
    %86 = arith.addf %68, %85 : vector<8x8xf32>
    %87 = arith.index_cast %c1_i32 : i32 to index
    %c0_74 = arith.constant 0 : index
    %c0_75 = arith.constant 0 : index
    %88 = vector.load %arg30[%87, %c0_74, %c0_75] : memref<8x8x8xf32, #tpu.memory_space<vmem>>, vector<1x8x8xf32>
    %89 = vector.shape_cast %88 : vector<1x8x8xf32> to vector<8x8xf32>
    %90 = vector.shape_cast %86 : vector<8x8xf32> to vector<1x8x8xf32>
    tpu.vector_store %arg30[%87, %c0_74, %c0_75], %90 {strides = array<i32>} : memref<8x8x8xf32, #tpu.memory_space<vmem>>, vector<1x8x8xf32>,
    %c2_i32 = arith.constant 2 : i32
    %91 = arith.index_cast %c2_i32 : i32 to index
    %c0_76 = arith.constant 0 : index
    %c0_77 = arith.constant 0 : index
    %92 = vector.load %arg29[%91, %c0_76, %c0_77] : memref<8x8x32xf32, #tpu.memory_space<vmem>>, vector<1x8x32xf32>
    %93 = vector.shape_cast %92 : vector<1x8x32xf32> to vector<8x32xf32>
    %cst_78 = arith.constant dense<0.000000e+00> : vector<8x32xf32>
    %94 = tpu.matmul %86, %8, %cst_78 {dimension_numbers = #tpu.dot_dimension_numbers<[1], [0], [0], [1], [0, 0, 1, 1], [], []>} : vector<8x8xf32>, vector<8x32xf32>, vector<8x32xf32> -> vector<8x32xf32>
    %95 = arith.addf %94, %93 : vector<8x32xf32>
    %96 = math.tanh %95 : vector<8x32xf32>
    %cst_79 = arith.constant dense<0.000000e+00> : vector<8x32xf32>
    %97 = tpu.matmul %96, %11, %cst_79 {dimension_numbers = #tpu.dot_dimension_numbers<[1], [0], [0], [1], [0, 0, 1, 1], [], []>} : vector<8x32xf32>, vector<32x32xf32>, vector<8x32xf32> -> vector<8x32xf32>
    %98 = arith.addf %97, %52 : vector<8x32xf32>
    %99 = math.tanh %98 : vector<8x32xf32>
    %cst_80 = arith.constant dense<0.000000e+00> : vector<8x8xf32>
    %100 = tpu.matmul %99, %13, %cst_80 {dimension_numbers = #tpu.dot_dimension_numbers<[1], [0], [0], [1], [0, 0, 1, 1], [], []>} : vector<8x32xf32>, vector<32x8xf32>, vector<8x8xf32> -> vector<8x8xf32>
    %101 = arith.addf %100, %54 : vector<8x8xf32>
    %cst_81 = arith.constant 5.000000e-02 : f32
    %102 = vector.broadcast %cst_81 : f32 to vector<8x8xf32>
    %103 = arith.mulf %102, %101 : vector<8x8xf32>
    %104 = arith.addf %86, %103 : vector<8x8xf32>
    %105 = arith.index_cast %c2_i32 : i32 to index
    %c0_82 = arith.constant 0 : index
    %c0_83 = arith.constant 0 : index
    %106 = vector.load %arg30[%105, %c0_82, %c0_83] : memref<8x8x8xf32, #tpu.memory_space<vmem>>, vector<1x8x8xf32>
    %107 = vector.shape_cast %106 : vector<1x8x8xf32> to vector<8x8xf32>
    %108 = vector.shape_cast %104 : vector<8x8xf32> to vector<1x8x8xf32>
    tpu.vector_store %arg30[%105, %c0_82, %c0_83], %108 {strides = array<i32>} : memref<8x8x8xf32, #tpu.memory_space<vmem>>, vector<1x8x8xf32>,
    %c3_i32 = arith.constant 3 : i32
    %109 = arith.index_cast %c3_i32 : i32 to index
    %c0_84 = arith.constant 0 : index
    %c0_85 = arith.constant 0 : index
    %110 = vector.load %arg29[%109, %c0_84, %c0_85] : memref<8x8x32xf32, #tpu.memory_space<vmem>>, vector<1x8x32xf32>
    %111 = vector.shape_cast %110 : vector<1x8x32xf32> to vector<8x32xf32>
    %cst_86 = arith.constant dense<0.000000e+00> : vector<8x32xf32>
    %112 = tpu.matmul %104, %8, %cst_86 {dimension_numbers = #tpu.dot_dimension_numbers<[1], [0], [0], [1], [0, 0, 1, 1], [], []>} : vector<8x8xf32>, vector<8x32xf32>, vector<8x32xf32> -> vector<8x32xf32>
    %113 = arith.addf %112, %111 : vector<8x32xf32>
    %114 = math.tanh %113 : vector<8x32xf32>
    %cst_87 = arith.constant dense<0.000000e+00> : vector<8x32xf32>
    %115 = tpu.matmul %114, %11, %cst_87 {dimension_numbers = #tpu.dot_dimension_numbers<[1], [0], [0], [1], [0, 0, 1, 1], [], []>} : vector<8x32xf32>, vector<32x32xf32>, vector<8x32xf32> -> vector<8x32xf32>
    %116 = arith.addf %115, %52 : vector<8x32xf32>
    %117 = math.tanh %116 : vector<8x32xf32>
    %cst_88 = arith.constant dense<0.000000e+00> : vector<8x8xf32>
    %118 = tpu.matmul %117, %13, %cst_88 {dimension_numbers = #tpu.dot_dimension_numbers<[1], [0], [0], [1], [0, 0, 1, 1], [], []>} : vector<8x32xf32>, vector<32x8xf32>, vector<8x8xf32> -> vector<8x8xf32>
    %119 = arith.addf %118, %54 : vector<8x8xf32>
    %cst_89 = arith.constant 5.000000e-02 : f32
    %120 = vector.broadcast %cst_89 : f32 to vector<8x8xf32>
    %121 = arith.mulf %120, %119 : vector<8x8xf32>
    %122 = arith.addf %104, %121 : vector<8x8xf32>
    %123 = arith.index_cast %c3_i32 : i32 to index
    %c0_90 = arith.constant 0 : index
    %c0_91 = arith.constant 0 : index
    %124 = vector.load %arg30[%123, %c0_90, %c0_91] : memref<8x8x8xf32, #tpu.memory_space<vmem>>, vector<1x8x8xf32>
    %125 = vector.shape_cast %124 : vector<1x8x8xf32> to vector<8x8xf32>
    %126 = vector.shape_cast %122 : vector<8x8xf32> to vector<1x8x8xf32>
    tpu.vector_store %arg30[%123, %c0_90, %c0_91], %126 {strides = array<i32>} : memref<8x8x8xf32, #tpu.memory_space<vmem>>, vector<1x8x8xf32>,
    %c4_i32 = arith.constant 4 : i32
    %127 = arith.index_cast %c4_i32 : i32 to index
    %c0_92 = arith.constant 0 : index
    %c0_93 = arith.constant 0 : index
    %128 = vector.load %arg29[%127, %c0_92, %c0_93] : memref<8x8x32xf32, #tpu.memory_space<vmem>>, vector<1x8x32xf32>
    %129 = vector.shape_cast %128 : vector<1x8x32xf32> to vector<8x32xf32>
    %cst_94 = arith.constant dense<0.000000e+00> : vector<8x32xf32>
    %130 = tpu.matmul %122, %8, %cst_94 {dimension_numbers = #tpu.dot_dimension_numbers<[1], [0], [0], [1], [0, 0, 1, 1], [], []>} : vector<8x8xf32>, vector<8x32xf32>, vector<8x32xf32> -> vector<8x32xf32>
    %131 = arith.addf %130, %129 : vector<8x32xf32>
    %132 = math.tanh %131 : vector<8x32xf32>
    %cst_95 = arith.constant dense<0.000000e+00> : vector<8x32xf32>
    %133 = tpu.matmul %132, %11, %cst_95 {dimension_numbers = #tpu.dot_dimension_numbers<[1], [0], [0], [1], [0, 0, 1, 1], [], []>} : vector<8x32xf32>, vector<32x32xf32>, vector<8x32xf32> -> vector<8x32xf32>
    %134 = arith.addf %133, %52 : vector<8x32xf32>
    %135 = math.tanh %134 : vector<8x32xf32>
    %cst_96 = arith.constant dense<0.000000e+00> : vector<8x8xf32>
    %136 = tpu.matmul %135, %13, %cst_96 {dimension_numbers = #tpu.dot_dimension_numbers<[1], [0], [0], [1], [0, 0, 1, 1], [], []>} : vector<8x32xf32>, vector<32x8xf32>, vector<8x8xf32> -> vector<8x8xf32>
    %137 = arith.addf %136, %54 : vector<8x8xf32>
    %cst_97 = arith.constant 5.000000e-02 : f32
    %138 = vector.broadcast %cst_97 : f32 to vector<8x8xf32>
    %139 = arith.mulf %138, %137 : vector<8x8xf32>
    %140 = arith.addf %122, %139 : vector<8x8xf32>
    %141 = arith.index_cast %c4_i32 : i32 to index
    %c0_98 = arith.constant 0 : index
    %c0_99 = arith.constant 0 : index
    %142 = vector.load %arg30[%141, %c0_98, %c0_99] : memref<8x8x8xf32, #tpu.memory_space<vmem>>, vector<1x8x8xf32>
    %143 = vector.shape_cast %142 : vector<1x8x8xf32> to vector<8x8xf32>
    %144 = vector.shape_cast %140 : vector<8x8xf32> to vector<1x8x8xf32>
    tpu.vector_store %arg30[%141, %c0_98, %c0_99], %144 {strides = array<i32>} : memref<8x8x8xf32, #tpu.memory_space<vmem>>, vector<1x8x8xf32>,
    %c5_i32 = arith.constant 5 : i32
    %145 = arith.index_cast %c5_i32 : i32 to index
    %c0_100 = arith.constant 0 : index
    %c0_101 = arith.constant 0 : index
    %146 = vector.load %arg29[%145, %c0_100, %c0_101] : memref<8x8x32xf32, #tpu.memory_space<vmem>>, vector<1x8x32xf32>
    %147 = vector.shape_cast %146 : vector<1x8x32xf32> to vector<8x32xf32>
    %cst_102 = arith.constant dense<0.000000e+00> : vector<8x32xf32>
    %148 = tpu.matmul %140, %8, %cst_102 {dimension_numbers = #tpu.dot_dimension_numbers<[1], [0], [0], [1], [0, 0, 1, 1], [], []>} : vector<8x8xf32>, vector<8x32xf32>, vector<8x32xf32> -> vector<8x32xf32>
    %149 = arith.addf %148, %147 : vector<8x32xf32>
    %150 = math.tanh %149 : vector<8x32xf32>
    %cst_103 = arith.constant dense<0.000000e+00> : vector<8x32xf32>
    %151 = tpu.matmul %150, %11, %cst_103 {dimension_numbers = #tpu.dot_dimension_numbers<[1], [0], [0], [1], [0, 0, 1, 1], [], []>} : vector<8x32xf32>, vector<32x32xf32>, vector<8x32xf32> -> vector<8x32xf32>
    %152 = arith.addf %151, %52 : vector<8x32xf32>
    %153 = math.tanh %152 : vector<8x32xf32>
    %cst_104 = arith.constant dense<0.000000e+00> : vector<8x8xf32>
    %154 = tpu.matmul %153, %13, %cst_104 {dimension_numbers = #tpu.dot_dimension_numbers<[1], [0], [0], [1], [0, 0, 1, 1], [], []>} : vector<8x32xf32>, vector<32x8xf32>, vector<8x8xf32> -> vector<8x8xf32>
    %155 = arith.addf %154, %54 : vector<8x8xf32>
    %cst_105 = arith.constant 5.000000e-02 : f32
    %156 = vector.broadcast %cst_105 : f32 to vector<8x8xf32>
    %157 = arith.mulf %156, %155 : vector<8x8xf32>
    %158 = arith.addf %140, %157 : vector<8x8xf32>
    %159 = arith.index_cast %c5_i32 : i32 to index
    %c0_106 = arith.constant 0 : index
    %c0_107 = arith.constant 0 : index
    %160 = vector.load %arg30[%159, %c0_106, %c0_107] : memref<8x8x8xf32, #tpu.memory_space<vmem>>, vector<1x8x8xf32>
    %161 = vector.shape_cast %160 : vector<1x8x8xf32> to vector<8x8xf32>
    %162 = vector.shape_cast %158 : vector<8x8xf32> to vector<1x8x8xf32>
    tpu.vector_store %arg30[%159, %c0_106, %c0_107], %162 {strides = array<i32>} : memref<8x8x8xf32, #tpu.memory_space<vmem>>, vector<1x8x8xf32>,
    %c6_i32 = arith.constant 6 : i32
    %163 = arith.index_cast %c6_i32 : i32 to index
    %c0_108 = arith.constant 0 : index
    %c0_109 = arith.constant 0 : index
    %164 = vector.load %arg29[%163, %c0_108, %c0_109] : memref<8x8x32xf32, #tpu.memory_space<vmem>>, vector<1x8x32xf32>
    %165 = vector.shape_cast %164 : vector<1x8x32xf32> to vector<8x32xf32>
    %cst_110 = arith.constant dense<0.000000e+00> : vector<8x32xf32>
    %166 = tpu.matmul %158, %8, %cst_110 {dimension_numbers = #tpu.dot_dimension_numbers<[1], [0], [0], [1], [0, 0, 1, 1], [], []>} : vector<8x8xf32>, vector<8x32xf32>, vector<8x32xf32> -> vector<8x32xf32>
    %167 = arith.addf %166, %165 : vector<8x32xf32>
    %168 = math.tanh %167 : vector<8x32xf32>
    %cst_111 = arith.constant dense<0.000000e+00> : vector<8x32xf32>
    %169 = tpu.matmul %168, %11, %cst_111 {dimension_numbers = #tpu.dot_dimension_numbers<[1], [0], [0], [1], [0, 0, 1, 1], [], []>} : vector<8x32xf32>, vector<32x32xf32>, vector<8x32xf32> -> vector<8x32xf32>
    %170 = arith.addf %169, %52 : vector<8x32xf32>
    %171 = math.tanh %170 : vector<8x32xf32>
    %cst_112 = arith.constant dense<0.000000e+00> : vector<8x8xf32>
    %172 = tpu.matmul %171, %13, %cst_112 {dimension_numbers = #tpu.dot_dimension_numbers<[1], [0], [0], [1], [0, 0, 1, 1], [], []>} : vector<8x32xf32>, vector<32x8xf32>, vector<8x8xf32> -> vector<8x8xf32>
    %173 = arith.addf %172, %54 : vector<8x8xf32>
    %cst_113 = arith.constant 5.000000e-02 : f32
    %174 = vector.broadcast %cst_113 : f32 to vector<8x8xf32>
    %175 = arith.mulf %174, %173 : vector<8x8xf32>
    %176 = arith.addf %158, %175 : vector<8x8xf32>
    %177 = arith.index_cast %c6_i32 : i32 to index
    %c0_114 = arith.constant 0 : index
    %c0_115 = arith.constant 0 : index
    %178 = vector.load %arg30[%177, %c0_114, %c0_115] : memref<8x8x8xf32, #tpu.memory_space<vmem>>, vector<1x8x8xf32>
    %179 = vector.shape_cast %178 : vector<1x8x8xf32> to vector<8x8xf32>
    %180 = vector.shape_cast %176 : vector<8x8xf32> to vector<1x8x8xf32>
    tpu.vector_store %arg30[%177, %c0_114, %c0_115], %180 {strides = array<i32>} : memref<8x8x8xf32, #tpu.memory_space<vmem>>, vector<1x8x8xf32>,
    %c7_i32 = arith.constant 7 : i32
    %181 = arith.index_cast %c7_i32 : i32 to index
    %c0_116 = arith.constant 0 : index
    %c0_117 = arith.constant 0 : index
    %182 = vector.load %arg29[%181, %c0_116, %c0_117] : memref<8x8x32xf32, #tpu.memory_space<vmem>>, vector<1x8x32xf32>
    %183 = vector.shape_cast %182 : vector<1x8x32xf32> to vector<8x32xf32>
    %cst_118 = arith.constant dense<0.000000e+00> : vector<8x32xf32>
    %184 = tpu.matmul %176, %8, %cst_118 {dimension_numbers = #tpu.dot_dimension_numbers<[1], [0], [0], [1], [0, 0, 1, 1], [], []>} : vector<8x8xf32>, vector<8x32xf32>, vector<8x32xf32> -> vector<8x32xf32>
    %185 = arith.addf %184, %183 : vector<8x32xf32>
    %186 = math.tanh %185 : vector<8x32xf32>
    %cst_119 = arith.constant dense<0.000000e+00> : vector<8x32xf32>
    %187 = tpu.matmul %186, %11, %cst_119 {dimension_numbers = #tpu.dot_dimension_numbers<[1], [0], [0], [1], [0, 0, 1, 1], [], []>} : vector<8x32xf32>, vector<32x32xf32>, vector<8x32xf32> -> vector<8x32xf32>
    %188 = arith.addf %187, %52 : vector<8x32xf32>
    %189 = math.tanh %188 : vector<8x32xf32>
    %cst_120 = arith.constant dense<0.000000e+00> : vector<8x8xf32>
    %190 = tpu.matmul %189, %13, %cst_120 {dimension_numbers = #tpu.dot_dimension_numbers<[1], [0], [0], [1], [0, 0, 1, 1], [], []>} : vector<8x32xf32>, vector<32x8xf32>, vector<8x8xf32> -> vector<8x8xf32>
    %191 = arith.addf %190, %54 : vector<8x8xf32>
    %cst_121 = arith.constant 5.000000e-02 : f32
    %192 = vector.broadcast %cst_121 : f32 to vector<8x8xf32>
    %193 = arith.mulf %192, %191 : vector<8x8xf32>
    %194 = arith.addf %176, %193 : vector<8x8xf32>
    %195 = arith.index_cast %c7_i32 : i32 to index
    %c0_122 = arith.constant 0 : index
    %c0_123 = arith.constant 0 : index
    %196 = vector.load %arg30[%195, %c0_122, %c0_123] : memref<8x8x8xf32, #tpu.memory_space<vmem>>, vector<1x8x8xf32>
    %197 = vector.shape_cast %196 : vector<1x8x8xf32> to vector<8x8xf32>
    %198 = vector.shape_cast %194 : vector<8x8xf32> to vector<1x8x8xf32>
    tpu.vector_store %arg30[%195, %c0_122, %c0_123], %198 {strides = array<i32>} : memref<8x8x8xf32, #tpu.memory_space<vmem>>, vector<1x8x8xf32>,
    %c8_i32 = arith.constant 8 : i32
    %c0_124 = arith.constant 0 : index
    %c0_125 = arith.constant 0 : index
    %c0_126 = arith.constant 0 : index
    %199 = vector.load %arg30[%c0_124, %c0_125, %c0_126] : memref<8x8x8xf32, #tpu.memory_space<vmem>>, vector<8x8x8xf32>
    %200 = vector.shape_cast %199 : vector<8x8x8xf32> to vector<64x8xf32>
    %cst_127 = arith.constant dense<0.000000e+00> : vector<64x32xf32>
    %201 = tpu.matmul %200, %15, %cst_127 {dimension_numbers = #tpu.dot_dimension_numbers<[1], [0], [0], [1], [0, 0, 1, 1], [], []>} : vector<64x8xf32>, vector<8x32xf32>, vector<64x32xf32> -> vector<64x32xf32>
    %202 = vector.broadcast %16 : vector<1x32xf32> to vector<64x32xf32>
    %203 = arith.addf %201, %202 : vector<64x32xf32>
    %204 = math.tanh %203 : vector<64x32xf32>
    %cst_128 = arith.constant dense<0.000000e+00> : vector<64x32xf32>
    %205 = tpu.matmul %204, %17, %cst_128 {dimension_numbers = #tpu.dot_dimension_numbers<[1], [0], [0], [1], [0, 0, 1, 1], [], []>} : vector<64x32xf32>, vector<32x32xf32>, vector<64x32xf32> -> vector<64x32xf32>
    %206 = vector.broadcast %18 : vector<1x32xf32> to vector<64x32xf32>
    %207 = arith.addf %205, %206 : vector<64x32xf32>
    %208 = math.tanh %207 : vector<64x32xf32>
    %cst_129 = arith.constant dense<0.000000e+00> : vector<64x4xf32>
    %209 = tpu.matmul %208, %19, %cst_129 {dimension_numbers = #tpu.dot_dimension_numbers<[1], [0], [0], [1], [0, 0, 1, 1], [], []>} : vector<64x32xf32>, vector<32x4xf32>, vector<64x4xf32> -> vector<64x4xf32>
    %210 = vector.broadcast %20 : vector<1x4xf32> to vector<64x4xf32>
    %211 = arith.addf %209, %210 : vector<64x4xf32>
    %212 = vector.shape_cast %211 : vector<64x4xf32> to vector<1x2x128xf32>
    %c0_130 = arith.constant 0 : index
    %c0_131 = arith.constant 0 : index
    %c0_132 = arith.constant 0 : index
    %213 = vector.load %arg25[%c0_130, %c0_131, %c0_132] : memref<1x2x128xf32, #tpu.memory_space<vmem>>, vector<1x2x128xf32>
    tpu.vector_store %arg25[%c0_130, %c0_131, %c0_132], %212 {strides = array<i32>} : memref<1x2x128xf32, #tpu.memory_space<vmem>>, vector<1x2x128xf32>,
    %214 = vector.shape_cast %199 : vector<8x8x8xf32> to vector<1x4x128xf32>
    %c0_133 = arith.constant 0 : index
    %c0_134 = arith.constant 0 : index
    %c0_135 = arith.constant 0 : index
    %215 = vector.load %arg26[%c0_133, %c0_134, %c0_135] : memref<1x4x128xf32, #tpu.memory_space<vmem>>, vector<1x4x128xf32>
    tpu.vector_store %arg26[%c0_133, %c0_134, %c0_135], %214 {strides = array<i32>} : memref<1x4x128xf32, #tpu.memory_space<vmem>>, vector<1x4x128xf32>,
    return
  }
  func.func @transform_0(%arg0: i32) -> (i32, i32, i32) {
    %c0_i32 = arith.constant 0 : i32
    %c0_i32_0 = arith.constant 0 : i32
    %c0_i32_1 = arith.constant 0 : i32
    return %c0_i32, %arg0, %c0_i32_0 : i32, i32, i32
  }
  func.func @transform_1(%arg0: i32) -> (i32, i32) {
    %c0_i32 = arith.constant 0 : i32
    %c0_i32_0 = arith.constant 0 : i32
    return %arg0, %c0_i32 : i32, i32
  }
  func.func @transform_2(%arg0: i32) -> (i32, i32) {
    %c0_i32 = arith.constant 0 : i32
    %c0_i32_0 = arith.constant 0 : i32
    return %arg0, %c0_i32 : i32, i32
  }
  func.func @transform_3(%arg0: i32) -> (i32, i32) {
    %c0_i32 = arith.constant 0 : i32
    %c0_i32_0 = arith.constant 0 : i32
    %c0_i32_1 = arith.constant 0 : i32
    return %c0_i32, %c0_i32_0 : i32, i32
  }
  func.func @transform_4(%arg0: i32) -> (i32, i32) {
    %c0_i32 = arith.constant 0 : i32
    %c0_i32_0 = arith.constant 0 : i32
    %c0_i32_1 = arith.constant 0 : i32
    return %c0_i32, %c0_i32_0 : i32, i32
  }
  func.func @transform_5(%arg0: i32) -> (i32, i32) {
    %c0_i32 = arith.constant 0 : i32
    %c0_i32_0 = arith.constant 0 : i32
    %c0_i32_1 = arith.constant 0 : i32
    return %c0_i32, %c0_i32_0 : i32, i32
  }
  func.func @transform_6(%arg0: i32) -> (i32, i32) {
    %c0_i32 = arith.constant 0 : i32
    %c0_i32_0 = arith.constant 0 : i32
    %c0_i32_1 = arith.constant 0 : i32
    return %c0_i32, %c0_i32_0 : i32, i32
  }
  func.func @transform_7(%arg0: i32) -> (i32, i32) {
    %c0_i32 = arith.constant 0 : i32
    %c0_i32_0 = arith.constant 0 : i32
    %c0_i32_1 = arith.constant 0 : i32
    return %c0_i32, %c0_i32_0 : i32, i32
  }
  func.func @transform_8(%arg0: i32) -> (i32, i32) {
    %c0_i32 = arith.constant 0 : i32
    %c0_i32_0 = arith.constant 0 : i32
    %c0_i32_1 = arith.constant 0 : i32
    return %c0_i32, %c0_i32_0 : i32, i32
  }
  func.func @transform_9(%arg0: i32) -> (i32, i32) {
    %c0_i32 = arith.constant 0 : i32
    %c0_i32_0 = arith.constant 0 : i32
    %c0_i32_1 = arith.constant 0 : i32
    return %c0_i32, %c0_i32_0 : i32, i32
  }
  func.func @transform_10(%arg0: i32) -> (i32, i32) {
    %c0_i32 = arith.constant 0 : i32
    %c0_i32_0 = arith.constant 0 : i32
    %c0_i32_1 = arith.constant 0 : i32
    return %c0_i32, %c0_i32_0 : i32, i32
  }
  func.func @transform_11(%arg0: i32) -> (i32, i32) {
    %c0_i32 = arith.constant 0 : i32
    %c0_i32_0 = arith.constant 0 : i32
    %c0_i32_1 = arith.constant 0 : i32
    return %c0_i32, %c0_i32_0 : i32, i32
  }
  func.func @transform_12(%arg0: i32) -> (i32, i32) {
    %c0_i32 = arith.constant 0 : i32
    %c0_i32_0 = arith.constant 0 : i32
    %c0_i32_1 = arith.constant 0 : i32
    return %c0_i32, %c0_i32_0 : i32, i32
  }
  func.func @transform_13(%arg0: i32) -> (i32, i32) {
    %c0_i32 = arith.constant 0 : i32
    %c0_i32_0 = arith.constant 0 : i32
    %c0_i32_1 = arith.constant 0 : i32
    return %c0_i32, %c0_i32_0 : i32, i32
  }
  func.func @transform_14(%arg0: i32) -> (i32, i32) {
    %c0_i32 = arith.constant 0 : i32
    %c0_i32_0 = arith.constant 0 : i32
    %c0_i32_1 = arith.constant 0 : i32
    return %c0_i32, %c0_i32_0 : i32, i32
  }
  func.func @transform_15(%arg0: i32) -> (i32, i32) {
    %c0_i32 = arith.constant 0 : i32
    %c0_i32_0 = arith.constant 0 : i32
    %c0_i32_1 = arith.constant 0 : i32
    return %c0_i32, %c0_i32_0 : i32, i32
  }
  func.func @transform_16(%arg0: i32) -> (i32, i32) {
    %c0_i32 = arith.constant 0 : i32
    %c0_i32_0 = arith.constant 0 : i32
    %c0_i32_1 = arith.constant 0 : i32
    return %c0_i32, %c0_i32_0 : i32, i32
  }
  func.func @transform_17(%arg0: i32) -> (i32, i32) {
    %c0_i32 = arith.constant 0 : i32
    %c0_i32_0 = arith.constant 0 : i32
    %c0_i32_1 = arith.constant 0 : i32
    return %c0_i32, %c0_i32_0 : i32, i32
  }
  func.func @transform_18(%arg0: i32) -> (i32, i32) {
    %c0_i32 = arith.constant 0 : i32
    %c0_i32_0 = arith.constant 0 : i32
    %c0_i32_1 = arith.constant 0 : i32
    return %c0_i32, %c0_i32_0 : i32, i32
  }
  func.func @transform_19(%arg0: i32) -> (i32, i32) {
    %c0_i32 = arith.constant 0 : i32
    %c0_i32_0 = arith.constant 0 : i32
    %c0_i32_1 = arith.constant 0 : i32
    return %c0_i32, %c0_i32_0 : i32, i32
  }
  func.func @transform_20(%arg0: i32) -> (i32, i32) {
    %c0_i32 = arith.constant 0 : i32
    %c0_i32_0 = arith.constant 0 : i32
    %c0_i32_1 = arith.constant 0 : i32
    return %c0_i32, %c0_i32_0 : i32, i32
  }
  func.func @transform_21(%arg0: i32) -> (i32, i32) {
    %c0_i32 = arith.constant 0 : i32
    %c0_i32_0 = arith.constant 0 : i32
    %c0_i32_1 = arith.constant 0 : i32
    return %c0_i32, %c0_i32_0 : i32, i32
  }
  func.func @transform_22(%arg0: i32) -> (i32, i32) {
    %c0_i32 = arith.constant 0 : i32
    %c0_i32_0 = arith.constant 0 : i32
    %c0_i32_1 = arith.constant 0 : i32
    return %c0_i32, %c0_i32_0 : i32, i32
  }
  func.func @transform_23(%arg0: i32) -> (i32, i32) {
    %c0_i32 = arith.constant 0 : i32
    %c0_i32_0 = arith.constant 0 : i32
    %c0_i32_1 = arith.constant 0 : i32
    return %c0_i32, %c0_i32_0 : i32, i32
  }
  func.func @transform_24(%arg0: i32) -> (i32, i32, i32) {
    %c0_i32 = arith.constant 0 : i32
    %c0_i32_0 = arith.constant 0 : i32
    %c0_i32_1 = arith.constant 0 : i32
    return %arg0, %c0_i32, %c0_i32_0 : i32, i32, i32
  }
  func.func @transform_25(%arg0: i32) -> (i32, i32, i32) {
    %c0_i32 = arith.constant 0 : i32
    %c0_i32_0 = arith.constant 0 : i32
    %c0_i32_1 = arith.constant 0 : i32
    return %arg0, %c0_i32, %c0_i32_0 : i32, i32, i32
  }
  func.func @transform_26(%arg0: i32) -> (i32, i32) {
    %c0_i32 = arith.constant 0 : i32
    %c0_i32_0 = arith.constant 0 : i32
    return %arg0, %c0_i32 : i32, i32
  }
  func.func @transform_27(%arg0: i32) -> (i32, i32) {
    %c0_i32 = arith.constant 0 : i32
    %c0_i32_0 = arith.constant 0 : i32
    return %arg0, %c0_i32 : i32, i32
  }
}

module attributes {stable_mosaic.version = 11 : i64} {
  func.func @multiregressor_kernel(%arg0: i32, %arg1: memref<8x8x8xf32, #tpu.memory_space<vmem>>, %arg2: memref<8x8xf32, #tpu.memory_space<vmem>>, %arg3: memref<8x4xf32, #tpu.memory_space<vmem>>, %arg4: memref<4x32xf32, #tpu.memory_space<vmem>>, %arg5: memref<1x32xf32, #tpu.memory_space<vmem>>, %arg6: memref<32x32xf32, #tpu.memory_space<vmem>>, %arg7: memref<1x32xf32, #tpu.memory_space<vmem>>, %arg8: memref<32x8xf32, #tpu.memory_space<vmem>>, %arg9: memref<1x8xf32, #tpu.memory_space<vmem>>, %arg10: memref<32x8xf32, #tpu.memory_space<vmem>>, %arg11: memref<1x8xf32, #tpu.memory_space<vmem>>, %arg12: memref<8x32xf32, #tpu.memory_space<vmem>>, %arg13: memref<8x32xf32, #tpu.memory_space<vmem>>, %arg14: memref<1x32xf32, #tpu.memory_space<vmem>>, %arg15: memref<32x32xf32, #tpu.memory_space<vmem>>, %arg16: memref<1x32xf32, #tpu.memory_space<vmem>>, %arg17: memref<32x8xf32, #tpu.memory_space<vmem>>, %arg18: memref<1x8xf32, #tpu.memory_space<vmem>>, %arg19: memref<8x32xf32, #tpu.memory_space<vmem>>, %arg20: memref<1x32xf32, #tpu.memory_space<vmem>>, %arg21: memref<32x32xf32, #tpu.memory_space<vmem>>, %arg22: memref<1x32xf32, #tpu.memory_space<vmem>>, %arg23: memref<32x4xf32, #tpu.memory_space<vmem>>, %arg24: memref<1x4xf32, #tpu.memory_space<vmem>>, %arg25: memref<8x8x4xf32, #tpu.memory_space<vmem>>, %arg26: memref<8x8x8xf32, #tpu.memory_space<vmem>>, %arg27: memref<8x8xf32, #tpu.memory_space<vmem>>, %arg28: memref<8x8xf32, #tpu.memory_space<vmem>>, %arg29: memref<8x8x32xf32, #tpu.memory_space<vmem>>, %arg30: memref<8x8x8xf32, #tpu.memory_space<vmem>>) attributes {dimension_semantics = [#tpu.dimension_semantics<parallel>], iteration_bounds = array<i64: 2>, scalar_prefetch = 0 : i64, scratch_operands = 2 : i64, tpu.core_type = #tpu.core_type<tc>, window_params = [{transform_indices = @transform_0, window_bounds = array<i64: 8, 8, 8>}, {transform_indices = @transform_1, window_bounds = array<i64: 8, 8>}, {transform_indices = @transform_2, window_bounds = array<i64: 8, 4>}, {pipeline_mode = #tpu.pipeline_mode<synchronous>, transform_indices = @transform_3, window_bounds = array<i64: 4, 32>}, {pipeline_mode = #tpu.pipeline_mode<synchronous>, transform_indices = @transform_4, window_bounds = array<i64: 1, 32>}, {pipeline_mode = #tpu.pipeline_mode<synchronous>, transform_indices = @transform_5, window_bounds = array<i64: 32, 32>}, {pipeline_mode = #tpu.pipeline_mode<synchronous>, transform_indices = @transform_6, window_bounds = array<i64: 1, 32>}, {pipeline_mode = #tpu.pipeline_mode<synchronous>, transform_indices = @transform_7, window_bounds = array<i64: 32, 8>}, {pipeline_mode = #tpu.pipeline_mode<synchronous>, transform_indices = @transform_8, window_bounds = array<i64: 1, 8>}, {pipeline_mode = #tpu.pipeline_mode<synchronous>, transform_indices = @transform_9, window_bounds = array<i64: 32, 8>}, {pipeline_mode = #tpu.pipeline_mode<synchronous>, transform_indices = @transform_10, window_bounds = array<i64: 1, 8>}, {pipeline_mode = #tpu.pipeline_mode<synchronous>, transform_indices = @transform_11, window_bounds = array<i64: 8, 32>}, {pipeline_mode = #tpu.pipeline_mode<synchronous>, transform_indices = @transform_12, window_bounds = array<i64: 8, 32>}, {pipeline_mode = #tpu.pipeline_mode<synchronous>, transform_indices = @transform_13, window_bounds = array<i64: 1, 32>}, {pipeline_mode = #tpu.pipeline_mode<synchronous>, transform_indices = @transform_14, window_bounds = array<i64: 32, 32>}, {pipeline_mode = #tpu.pipeline_mode<synchronous>, transform_indices = @transform_15, window_bounds = array<i64: 1, 32>}, {pipeline_mode = #tpu.pipeline_mode<synchronous>, transform_indices = @transform_16, window_bounds = array<i64: 32, 8>}, {pipeline_mode = #tpu.pipeline_mode<synchronous>, transform_indices = @transform_17, window_bounds = array<i64: 1, 8>}, {pipeline_mode = #tpu.pipeline_mode<synchronous>, transform_indices = @transform_18, window_bounds = array<i64: 8, 32>}, {pipeline_mode = #tpu.pipeline_mode<synchronous>, transform_indices = @transform_19, window_bounds = array<i64: 1, 32>}, {pipeline_mode = #tpu.pipeline_mode<synchronous>, transform_indices = @transform_20, window_bounds = array<i64: 32, 32>}, {pipeline_mode = #tpu.pipeline_mode<synchronous>, transform_indices = @transform_21, window_bounds = array<i64: 1, 32>}, {pipeline_mode = #tpu.pipeline_mode<synchronous>, transform_indices = @transform_22, window_bounds = array<i64: 32, 4>}, {pipeline_mode = #tpu.pipeline_mode<synchronous>, transform_indices = @transform_23, window_bounds = array<i64: 1, 4>}, {transform_indices = @transform_24, window_bounds = array<i64: 8, 8, 4>}, {transform_indices = @transform_25, window_bounds = array<i64: 8, 8, 8>}, {transform_indices = @transform_26, window_bounds = array<i64: 8, 8>}, {transform_indices = @transform_27, window_bounds = array<i64: 8, 8>}]} {
    %c0 = arith.constant 0 : index
    %c0_0 = arith.constant 0 : index
    %0 = vector.load %arg4[%c0, %c0_0] : memref<4x32xf32, #tpu.memory_space<vmem>>, vector<4x32xf32>
    %c0_1 = arith.constant 0 : index
    %c0_2 = arith.constant 0 : index
    %1 = vector.load %arg5[%c0_1, %c0_2] : memref<1x32xf32, #tpu.memory_space<vmem>>, vector<1x32xf32>
    %c0_3 = arith.constant 0 : index
    %c0_4 = arith.constant 0 : index
    %2 = vector.load %arg6[%c0_3, %c0_4] : memref<32x32xf32, #tpu.memory_space<vmem>>, vector<32x32xf32>
    %c0_5 = arith.constant 0 : index
    %c0_6 = arith.constant 0 : index
    %3 = vector.load %arg7[%c0_5, %c0_6] : memref<1x32xf32, #tpu.memory_space<vmem>>, vector<1x32xf32>
    %c0_7 = arith.constant 0 : index
    %c0_8 = arith.constant 0 : index
    %4 = vector.load %arg8[%c0_7, %c0_8] : memref<32x8xf32, #tpu.memory_space<vmem>>, vector<32x8xf32>
    %c0_9 = arith.constant 0 : index
    %c0_10 = arith.constant 0 : index
    %5 = vector.load %arg9[%c0_9, %c0_10] : memref<1x8xf32, #tpu.memory_space<vmem>>, vector<1x8xf32>
    %c0_11 = arith.constant 0 : index
    %c0_12 = arith.constant 0 : index
    %6 = vector.load %arg10[%c0_11, %c0_12] : memref<32x8xf32, #tpu.memory_space<vmem>>, vector<32x8xf32>
    %c0_13 = arith.constant 0 : index
    %c0_14 = arith.constant 0 : index
    %7 = vector.load %arg11[%c0_13, %c0_14] : memref<1x8xf32, #tpu.memory_space<vmem>>, vector<1x8xf32>
    %c0_15 = arith.constant 0 : index
    %c0_16 = arith.constant 0 : index
    %8 = vector.load %arg12[%c0_15, %c0_16] : memref<8x32xf32, #tpu.memory_space<vmem>>, vector<8x32xf32>
    %c0_17 = arith.constant 0 : index
    %c0_18 = arith.constant 0 : index
    %9 = vector.load %arg13[%c0_17, %c0_18] : memref<8x32xf32, #tpu.memory_space<vmem>>, vector<8x32xf32>
    %c0_19 = arith.constant 0 : index
    %c0_20 = arith.constant 0 : index
    %10 = vector.load %arg14[%c0_19, %c0_20] : memref<1x32xf32, #tpu.memory_space<vmem>>, vector<1x32xf32>
    %c0_21 = arith.constant 0 : index
    %c0_22 = arith.constant 0 : index
    %11 = vector.load %arg15[%c0_21, %c0_22] : memref<32x32xf32, #tpu.memory_space<vmem>>, vector<32x32xf32>
    %c0_23 = arith.constant 0 : index
    %c0_24 = arith.constant 0 : index
    %12 = vector.load %arg16[%c0_23, %c0_24] : memref<1x32xf32, #tpu.memory_space<vmem>>, vector<1x32xf32>
    %c0_25 = arith.constant 0 : index
    %c0_26 = arith.constant 0 : index
    %13 = vector.load %arg17[%c0_25, %c0_26] : memref<32x8xf32, #tpu.memory_space<vmem>>, vector<32x8xf32>
    %c0_27 = arith.constant 0 : index
    %c0_28 = arith.constant 0 : index
    %14 = vector.load %arg18[%c0_27, %c0_28] : memref<1x8xf32, #tpu.memory_space<vmem>>, vector<1x8xf32>
    %c0_29 = arith.constant 0 : index
    %c0_30 = arith.constant 0 : index
    %15 = vector.load %arg19[%c0_29, %c0_30] : memref<8x32xf32, #tpu.memory_space<vmem>>, vector<8x32xf32>
    %c0_31 = arith.constant 0 : index
    %c0_32 = arith.constant 0 : index
    %16 = vector.load %arg20[%c0_31, %c0_32] : memref<1x32xf32, #tpu.memory_space<vmem>>, vector<1x32xf32>
    %c0_33 = arith.constant 0 : index
    %c0_34 = arith.constant 0 : index
    %17 = vector.load %arg21[%c0_33, %c0_34] : memref<32x32xf32, #tpu.memory_space<vmem>>, vector<32x32xf32>
    %c0_35 = arith.constant 0 : index
    %c0_36 = arith.constant 0 : index
    %18 = vector.load %arg22[%c0_35, %c0_36] : memref<1x32xf32, #tpu.memory_space<vmem>>, vector<1x32xf32>
    %c0_37 = arith.constant 0 : index
    %c0_38 = arith.constant 0 : index
    %19 = vector.load %arg23[%c0_37, %c0_38] : memref<32x4xf32, #tpu.memory_space<vmem>>, vector<32x4xf32>
    %c0_39 = arith.constant 0 : index
    %c0_40 = arith.constant 0 : index
    %20 = vector.load %arg24[%c0_39, %c0_40] : memref<1x4xf32, #tpu.memory_space<vmem>>, vector<1x4xf32>
    %c0_41 = arith.constant 0 : index
    %c0_42 = arith.constant 0 : index
    %21 = vector.load %arg3[%c0_41, %c0_42] : memref<8x4xf32, #tpu.memory_space<vmem>>, vector<8x4xf32>
    %cst = arith.constant dense<0.000000e+00> : vector<8x32xf32>
    %22 = tpu.matmul %21, %0, %cst {dimension_numbers = #tpu.dot_dimension_numbers<[1], [0], [0], [1], [0, 0, 1, 1], [], []>} : vector<8x4xf32>, vector<4x32xf32>, vector<8x32xf32> -> vector<8x32xf32>
    %23 = vector.broadcast %1 : vector<1x32xf32> to vector<8x32xf32>
    %24 = arith.addf %22, %23 : vector<8x32xf32>
    %25 = math.tanh %24 : vector<8x32xf32>
    %cst_43 = arith.constant dense<0.000000e+00> : vector<8x32xf32>
    %26 = tpu.matmul %25, %2, %cst_43 {dimension_numbers = #tpu.dot_dimension_numbers<[1], [0], [0], [1], [0, 0, 1, 1], [], []>} : vector<8x32xf32>, vector<32x32xf32>, vector<8x32xf32> -> vector<8x32xf32>
    %27 = vector.broadcast %3 : vector<1x32xf32> to vector<8x32xf32>
    %28 = arith.addf %26, %27 : vector<8x32xf32>
    %29 = math.tanh %28 : vector<8x32xf32>
    %cst_44 = arith.constant dense<0.000000e+00> : vector<8x8xf32>
    %30 = tpu.matmul %29, %4, %cst_44 {dimension_numbers = #tpu.dot_dimension_numbers<[1], [0], [0], [1], [0, 0, 1, 1], [], []>} : vector<8x32xf32>, vector<32x8xf32>, vector<8x8xf32> -> vector<8x8xf32>
    %31 = vector.broadcast %5 : vector<1x8xf32> to vector<8x8xf32>
    %32 = arith.addf %30, %31 : vector<8x8xf32>
    %cst_45 = arith.constant dense<0.000000e+00> : vector<8x8xf32>
    %33 = tpu.matmul %29, %6, %cst_45 {dimension_numbers = #tpu.dot_dimension_numbers<[1], [0], [0], [1], [0, 0, 1, 1], [], []>} : vector<8x32xf32>, vector<32x8xf32>, vector<8x8xf32> -> vector<8x8xf32>
    %34 = vector.broadcast %7 : vector<1x8xf32> to vector<8x8xf32>
    %35 = arith.addf %33, %34 : vector<8x8xf32>
    %cst_46 = arith.constant 5.000000e-01 : f32
    %36 = vector.broadcast %cst_46 : f32 to vector<8x8xf32>
    %37 = arith.mulf %35, %36 : vector<8x8xf32>
    %38 = math.exp %37 : vector<8x8xf32>
    %c0_47 = arith.constant 0 : index
    %c0_48 = arith.constant 0 : index
    %39 = vector.load %arg2[%c0_47, %c0_48] : memref<8x8xf32, #tpu.memory_space<vmem>>, vector<8x8xf32>
    %40 = arith.mulf %38, %39 : vector<8x8xf32>
    %41 = arith.addf %32, %40 : vector<8x8xf32>
    %c0_49 = arith.constant 0 : index
    %c0_50 = arith.constant 0 : index
    %42 = vector.load %arg27[%c0_49, %c0_50] : memref<8x8xf32, #tpu.memory_space<vmem>>, vector<8x8xf32>
    tpu.vector_store %arg27[%c0_49, %c0_50], %32 {strides = array<i32>} : memref<8x8xf32, #tpu.memory_space<vmem>>, vector<8x8xf32>,
    %c0_51 = arith.constant 0 : index
    %c0_52 = arith.constant 0 : index
    %43 = vector.load %arg28[%c0_51, %c0_52] : memref<8x8xf32, #tpu.memory_space<vmem>>, vector<8x8xf32>
    tpu.vector_store %arg28[%c0_51, %c0_52], %35 {strides = array<i32>} : memref<8x8xf32, #tpu.memory_space<vmem>>, vector<8x8xf32>,
    %c0_53 = arith.constant 0 : index
    %c0_54 = arith.constant 0 : index
    %c0_55 = arith.constant 0 : index
    %44 = vector.load %arg1[%c0_53, %c0_54, %c0_55] : memref<8x8x8xf32, #tpu.memory_space<vmem>>, vector<8x8x8xf32>
    %45 = vector.shape_cast %44 : vector<8x8x8xf32> to vector<64x8xf32>
    %cst_56 = arith.constant dense<0.000000e+00> : vector<64x32xf32>
    %46 = tpu.matmul %45, %9, %cst_56 {dimension_numbers = #tpu.dot_dimension_numbers<[1], [0], [0], [1], [0, 0, 1, 1], [], []>} : vector<64x8xf32>, vector<8x32xf32>, vector<64x32xf32> -> vector<64x32xf32>
    %47 = vector.broadcast %10 : vector<1x32xf32> to vector<64x32xf32>
    %48 = arith.addf %46, %47 : vector<64x32xf32>
    %49 = vector.shape_cast %48 : vector<64x32xf32> to vector<8x8x32xf32>
    %c0_57 = arith.constant 0 : index
    %c0_58 = arith.constant 0 : index
    %c0_59 = arith.constant 0 : index
    %50 = vector.load %arg29[%c0_57, %c0_58, %c0_59] : memref<8x8x32xf32, #tpu.memory_space<vmem>>, vector<8x8x32xf32>
    tpu.vector_store %arg29[%c0_57, %c0_58, %c0_59], %49 {strides = array<i32>} : memref<8x8x32xf32, #tpu.memory_space<vmem>>, vector<8x8x32xf32>,
    %51 = vector.shape_cast %12 : vector<1x32xf32> to vector<1x32xf32>
    %52 = vector.broadcast %51 : vector<1x32xf32> to vector<8x32xf32>
    %53 = vector.shape_cast %14 : vector<1x8xf32> to vector<1x8xf32>
    %54 = vector.broadcast %53 : vector<1x8xf32> to vector<8x8xf32>
    %c0_i32 = arith.constant 0 : i32
    %55 = arith.index_cast %c0_i32 : i32 to index
    %c0_60 = arith.constant 0 : index
    %c0_61 = arith.constant 0 : index
    %56 = vector.load %arg29[%55, %c0_60, %c0_61] : memref<8x8x32xf32, #tpu.memory_space<vmem>>, vector<1x8x32xf32>
    %57 = vector.shape_cast %56 : vector<1x8x32xf32> to vector<8x32xf32>
    %cst_62 = arith.constant dense<0.000000e+00> : vector<8x32xf32>
    %58 = tpu.matmul %41, %8, %cst_62 {dimension_numbers = #tpu.dot_dimension_numbers<[1], [0], [0], [1], [0, 0, 1, 1], [], []>} : vector<8x8xf32>, vector<8x32xf32>, vector<8x32xf32> -> vector<8x32xf32>
    %59 = arith.addf %58, %57 : vector<8x32xf32>
    %60 = math.tanh %59 : vector<8x32xf32>
    %cst_63 = arith.constant dense<0.000000e+00> : vector<8x32xf32>
    %61 = tpu.matmul %60, %11, %cst_63 {dimension_numbers = #tpu.dot_dimension_numbers<[1], [0], [0], [1], [0, 0, 1, 1], [], []>} : vector<8x32xf32>, vector<32x32xf32>, vector<8x32xf32> -> vector<8x32xf32>
    %62 = arith.addf %61, %52 : vector<8x32xf32>
    %63 = math.tanh %62 : vector<8x32xf32>
    %cst_64 = arith.constant dense<0.000000e+00> : vector<8x8xf32>
    %64 = tpu.matmul %63, %13, %cst_64 {dimension_numbers = #tpu.dot_dimension_numbers<[1], [0], [0], [1], [0, 0, 1, 1], [], []>} : vector<8x32xf32>, vector<32x8xf32>, vector<8x8xf32> -> vector<8x8xf32>
    %65 = arith.addf %64, %54 : vector<8x8xf32>
    %cst_65 = arith.constant 5.000000e-02 : f32
    %66 = vector.broadcast %cst_65 : f32 to vector<8x8xf32>
    %67 = arith.mulf %66, %65 : vector<8x8xf32>
    %68 = arith.addf %41, %67 : vector<8x8xf32>
    %69 = arith.index_cast %c0_i32 : i32 to index
    %c0_66 = arith.constant 0 : index
    %c0_67 = arith.constant 0 : index
    %70 = vector.load %arg30[%69, %c0_66, %c0_67] : memref<8x8x8xf32, #tpu.memory_space<vmem>>, vector<1x8x8xf32>
    %71 = vector.shape_cast %70 : vector<1x8x8xf32> to vector<8x8xf32>
    %72 = vector.shape_cast %68 : vector<8x8xf32> to vector<1x8x8xf32>
    tpu.vector_store %arg30[%69, %c0_66, %c0_67], %72 {strides = array<i32>} : memref<8x8x8xf32, #tpu.memory_space<vmem>>, vector<1x8x8xf32>,
    %c1_i32 = arith.constant 1 : i32
    %73 = arith.index_cast %c1_i32 : i32 to index
    %c0_68 = arith.constant 0 : index
    %c0_69 = arith.constant 0 : index
    %74 = vector.load %arg29[%73, %c0_68, %c0_69] : memref<8x8x32xf32, #tpu.memory_space<vmem>>, vector<1x8x32xf32>
    %75 = vector.shape_cast %74 : vector<1x8x32xf32> to vector<8x32xf32>
    %cst_70 = arith.constant dense<0.000000e+00> : vector<8x32xf32>
    %76 = tpu.matmul %68, %8, %cst_70 {dimension_numbers = #tpu.dot_dimension_numbers<[1], [0], [0], [1], [0, 0, 1, 1], [], []>} : vector<8x8xf32>, vector<8x32xf32>, vector<8x32xf32> -> vector<8x32xf32>
    %77 = arith.addf %76, %75 : vector<8x32xf32>
    %78 = math.tanh %77 : vector<8x32xf32>
    %cst_71 = arith.constant dense<0.000000e+00> : vector<8x32xf32>
    %79 = tpu.matmul %78, %11, %cst_71 {dimension_numbers = #tpu.dot_dimension_numbers<[1], [0], [0], [1], [0, 0, 1, 1], [], []>} : vector<8x32xf32>, vector<32x32xf32>, vector<8x32xf32> -> vector<8x32xf32>
    %80 = arith.addf %79, %52 : vector<8x32xf32>
    %81 = math.tanh %80 : vector<8x32xf32>
    %cst_72 = arith.constant dense<0.000000e+00> : vector<8x8xf32>
    %82 = tpu.matmul %81, %13, %cst_72 {dimension_numbers = #tpu.dot_dimension_numbers<[1], [0], [0], [1], [0, 0, 1, 1], [], []>} : vector<8x32xf32>, vector<32x8xf32>, vector<8x8xf32> -> vector<8x8xf32>
    %83 = arith.addf %82, %54 : vector<8x8xf32>
    %cst_73 = arith.constant 5.000000e-02 : f32
    %84 = vector.broadcast %cst_73 : f32 to vector<8x8xf32>
    %85 = arith.mulf %84, %83 : vector<8x8xf32>
    %86 = arith.addf %68, %85 : vector<8x8xf32>
    %87 = arith.index_cast %c1_i32 : i32 to index
    %c0_74 = arith.constant 0 : index
    %c0_75 = arith.constant 0 : index
    %88 = vector.load %arg30[%87, %c0_74, %c0_75] : memref<8x8x8xf32, #tpu.memory_space<vmem>>, vector<1x8x8xf32>
    %89 = vector.shape_cast %88 : vector<1x8x8xf32> to vector<8x8xf32>
    %90 = vector.shape_cast %86 : vector<8x8xf32> to vector<1x8x8xf32>
    tpu.vector_store %arg30[%87, %c0_74, %c0_75], %90 {strides = array<i32>} : memref<8x8x8xf32, #tpu.memory_space<vmem>>, vector<1x8x8xf32>,
    %c2_i32 = arith.constant 2 : i32
    %91 = arith.index_cast %c2_i32 : i32 to index
    %c0_76 = arith.constant 0 : index
    %c0_77 = arith.constant 0 : index
    %92 = vector.load %arg29[%91, %c0_76, %c0_77] : memref<8x8x32xf32, #tpu.memory_space<vmem>>, vector<1x8x32xf32>
    %93 = vector.shape_cast %92 : vector<1x8x32xf32> to vector<8x32xf32>
    %cst_78 = arith.constant dense<0.000000e+00> : vector<8x32xf32>
    %94 = tpu.matmul %86, %8, %cst_78 {dimension_numbers = #tpu.dot_dimension_numbers<[1], [0], [0], [1], [0, 0, 1, 1], [], []>} : vector<8x8xf32>, vector<8x32xf32>, vector<8x32xf32> -> vector<8x32xf32>
    %95 = arith.addf %94, %93 : vector<8x32xf32>
    %96 = math.tanh %95 : vector<8x32xf32>
    %cst_79 = arith.constant dense<0.000000e+00> : vector<8x32xf32>
    %97 = tpu.matmul %96, %11, %cst_79 {dimension_numbers = #tpu.dot_dimension_numbers<[1], [0], [0], [1], [0, 0, 1, 1], [], []>} : vector<8x32xf32>, vector<32x32xf32>, vector<8x32xf32> -> vector<8x32xf32>
    %98 = arith.addf %97, %52 : vector<8x32xf32>
    %99 = math.tanh %98 : vector<8x32xf32>
    %cst_80 = arith.constant dense<0.000000e+00> : vector<8x8xf32>
    %100 = tpu.matmul %99, %13, %cst_80 {dimension_numbers = #tpu.dot_dimension_numbers<[1], [0], [0], [1], [0, 0, 1, 1], [], []>} : vector<8x32xf32>, vector<32x8xf32>, vector<8x8xf32> -> vector<8x8xf32>
    %101 = arith.addf %100, %54 : vector<8x8xf32>
    %cst_81 = arith.constant 5.000000e-02 : f32
    %102 = vector.broadcast %cst_81 : f32 to vector<8x8xf32>
    %103 = arith.mulf %102, %101 : vector<8x8xf32>
    %104 = arith.addf %86, %103 : vector<8x8xf32>
    %105 = arith.index_cast %c2_i32 : i32 to index
    %c0_82 = arith.constant 0 : index
    %c0_83 = arith.constant 0 : index
    %106 = vector.load %arg30[%105, %c0_82, %c0_83] : memref<8x8x8xf32, #tpu.memory_space<vmem>>, vector<1x8x8xf32>
    %107 = vector.shape_cast %106 : vector<1x8x8xf32> to vector<8x8xf32>
    %108 = vector.shape_cast %104 : vector<8x8xf32> to vector<1x8x8xf32>
    tpu.vector_store %arg30[%105, %c0_82, %c0_83], %108 {strides = array<i32>} : memref<8x8x8xf32, #tpu.memory_space<vmem>>, vector<1x8x8xf32>,
    %c3_i32 = arith.constant 3 : i32
    %109 = arith.index_cast %c3_i32 : i32 to index
    %c0_84 = arith.constant 0 : index
    %c0_85 = arith.constant 0 : index
    %110 = vector.load %arg29[%109, %c0_84, %c0_85] : memref<8x8x32xf32, #tpu.memory_space<vmem>>, vector<1x8x32xf32>
    %111 = vector.shape_cast %110 : vector<1x8x32xf32> to vector<8x32xf32>
    %cst_86 = arith.constant dense<0.000000e+00> : vector<8x32xf32>
    %112 = tpu.matmul %104, %8, %cst_86 {dimension_numbers = #tpu.dot_dimension_numbers<[1], [0], [0], [1], [0, 0, 1, 1], [], []>} : vector<8x8xf32>, vector<8x32xf32>, vector<8x32xf32> -> vector<8x32xf32>
    %113 = arith.addf %112, %111 : vector<8x32xf32>
    %114 = math.tanh %113 : vector<8x32xf32>
    %cst_87 = arith.constant dense<0.000000e+00> : vector<8x32xf32>
    %115 = tpu.matmul %114, %11, %cst_87 {dimension_numbers = #tpu.dot_dimension_numbers<[1], [0], [0], [1], [0, 0, 1, 1], [], []>} : vector<8x32xf32>, vector<32x32xf32>, vector<8x32xf32> -> vector<8x32xf32>
    %116 = arith.addf %115, %52 : vector<8x32xf32>
    %117 = math.tanh %116 : vector<8x32xf32>
    %cst_88 = arith.constant dense<0.000000e+00> : vector<8x8xf32>
    %118 = tpu.matmul %117, %13, %cst_88 {dimension_numbers = #tpu.dot_dimension_numbers<[1], [0], [0], [1], [0, 0, 1, 1], [], []>} : vector<8x32xf32>, vector<32x8xf32>, vector<8x8xf32> -> vector<8x8xf32>
    %119 = arith.addf %118, %54 : vector<8x8xf32>
    %cst_89 = arith.constant 5.000000e-02 : f32
    %120 = vector.broadcast %cst_89 : f32 to vector<8x8xf32>
    %121 = arith.mulf %120, %119 : vector<8x8xf32>
    %122 = arith.addf %104, %121 : vector<8x8xf32>
    %123 = arith.index_cast %c3_i32 : i32 to index
    %c0_90 = arith.constant 0 : index
    %c0_91 = arith.constant 0 : index
    %124 = vector.load %arg30[%123, %c0_90, %c0_91] : memref<8x8x8xf32, #tpu.memory_space<vmem>>, vector<1x8x8xf32>
    %125 = vector.shape_cast %124 : vector<1x8x8xf32> to vector<8x8xf32>
    %126 = vector.shape_cast %122 : vector<8x8xf32> to vector<1x8x8xf32>
    tpu.vector_store %arg30[%123, %c0_90, %c0_91], %126 {strides = array<i32>} : memref<8x8x8xf32, #tpu.memory_space<vmem>>, vector<1x8x8xf32>,
    %c4_i32 = arith.constant 4 : i32
    %127 = arith.index_cast %c4_i32 : i32 to index
    %c0_92 = arith.constant 0 : index
    %c0_93 = arith.constant 0 : index
    %128 = vector.load %arg29[%127, %c0_92, %c0_93] : memref<8x8x32xf32, #tpu.memory_space<vmem>>, vector<1x8x32xf32>
    %129 = vector.shape_cast %128 : vector<1x8x32xf32> to vector<8x32xf32>
    %cst_94 = arith.constant dense<0.000000e+00> : vector<8x32xf32>
    %130 = tpu.matmul %122, %8, %cst_94 {dimension_numbers = #tpu.dot_dimension_numbers<[1], [0], [0], [1], [0, 0, 1, 1], [], []>} : vector<8x8xf32>, vector<8x32xf32>, vector<8x32xf32> -> vector<8x32xf32>
    %131 = arith.addf %130, %129 : vector<8x32xf32>
    %132 = math.tanh %131 : vector<8x32xf32>
    %cst_95 = arith.constant dense<0.000000e+00> : vector<8x32xf32>
    %133 = tpu.matmul %132, %11, %cst_95 {dimension_numbers = #tpu.dot_dimension_numbers<[1], [0], [0], [1], [0, 0, 1, 1], [], []>} : vector<8x32xf32>, vector<32x32xf32>, vector<8x32xf32> -> vector<8x32xf32>
    %134 = arith.addf %133, %52 : vector<8x32xf32>
    %135 = math.tanh %134 : vector<8x32xf32>
    %cst_96 = arith.constant dense<0.000000e+00> : vector<8x8xf32>
    %136 = tpu.matmul %135, %13, %cst_96 {dimension_numbers = #tpu.dot_dimension_numbers<[1], [0], [0], [1], [0, 0, 1, 1], [], []>} : vector<8x32xf32>, vector<32x8xf32>, vector<8x8xf32> -> vector<8x8xf32>
    %137 = arith.addf %136, %54 : vector<8x8xf32>
    %cst_97 = arith.constant 5.000000e-02 : f32
    %138 = vector.broadcast %cst_97 : f32 to vector<8x8xf32>
    %139 = arith.mulf %138, %137 : vector<8x8xf32>
    %140 = arith.addf %122, %139 : vector<8x8xf32>
    %141 = arith.index_cast %c4_i32 : i32 to index
    %c0_98 = arith.constant 0 : index
    %c0_99 = arith.constant 0 : index
    %142 = vector.load %arg30[%141, %c0_98, %c0_99] : memref<8x8x8xf32, #tpu.memory_space<vmem>>, vector<1x8x8xf32>
    %143 = vector.shape_cast %142 : vector<1x8x8xf32> to vector<8x8xf32>
    %144 = vector.shape_cast %140 : vector<8x8xf32> to vector<1x8x8xf32>
    tpu.vector_store %arg30[%141, %c0_98, %c0_99], %144 {strides = array<i32>} : memref<8x8x8xf32, #tpu.memory_space<vmem>>, vector<1x8x8xf32>,
    %c5_i32 = arith.constant 5 : i32
    %145 = arith.index_cast %c5_i32 : i32 to index
    %c0_100 = arith.constant 0 : index
    %c0_101 = arith.constant 0 : index
    %146 = vector.load %arg29[%145, %c0_100, %c0_101] : memref<8x8x32xf32, #tpu.memory_space<vmem>>, vector<1x8x32xf32>
    %147 = vector.shape_cast %146 : vector<1x8x32xf32> to vector<8x32xf32>
    %cst_102 = arith.constant dense<0.000000e+00> : vector<8x32xf32>
    %148 = tpu.matmul %140, %8, %cst_102 {dimension_numbers = #tpu.dot_dimension_numbers<[1], [0], [0], [1], [0, 0, 1, 1], [], []>} : vector<8x8xf32>, vector<8x32xf32>, vector<8x32xf32> -> vector<8x32xf32>
    %149 = arith.addf %148, %147 : vector<8x32xf32>
    %150 = math.tanh %149 : vector<8x32xf32>
    %cst_103 = arith.constant dense<0.000000e+00> : vector<8x32xf32>
    %151 = tpu.matmul %150, %11, %cst_103 {dimension_numbers = #tpu.dot_dimension_numbers<[1], [0], [0], [1], [0, 0, 1, 1], [], []>} : vector<8x32xf32>, vector<32x32xf32>, vector<8x32xf32> -> vector<8x32xf32>
    %152 = arith.addf %151, %52 : vector<8x32xf32>
    %153 = math.tanh %152 : vector<8x32xf32>
    %cst_104 = arith.constant dense<0.000000e+00> : vector<8x8xf32>
    %154 = tpu.matmul %153, %13, %cst_104 {dimension_numbers = #tpu.dot_dimension_numbers<[1], [0], [0], [1], [0, 0, 1, 1], [], []>} : vector<8x32xf32>, vector<32x8xf32>, vector<8x8xf32> -> vector<8x8xf32>
    %155 = arith.addf %154, %54 : vector<8x8xf32>
    %cst_105 = arith.constant 5.000000e-02 : f32
    %156 = vector.broadcast %cst_105 : f32 to vector<8x8xf32>
    %157 = arith.mulf %156, %155 : vector<8x8xf32>
    %158 = arith.addf %140, %157 : vector<8x8xf32>
    %159 = arith.index_cast %c5_i32 : i32 to index
    %c0_106 = arith.constant 0 : index
    %c0_107 = arith.constant 0 : index
    %160 = vector.load %arg30[%159, %c0_106, %c0_107] : memref<8x8x8xf32, #tpu.memory_space<vmem>>, vector<1x8x8xf32>
    %161 = vector.shape_cast %160 : vector<1x8x8xf32> to vector<8x8xf32>
    %162 = vector.shape_cast %158 : vector<8x8xf32> to vector<1x8x8xf32>
    tpu.vector_store %arg30[%159, %c0_106, %c0_107], %162 {strides = array<i32>} : memref<8x8x8xf32, #tpu.memory_space<vmem>>, vector<1x8x8xf32>,
    %c6_i32 = arith.constant 6 : i32
    %163 = arith.index_cast %c6_i32 : i32 to index
    %c0_108 = arith.constant 0 : index
    %c0_109 = arith.constant 0 : index
    %164 = vector.load %arg29[%163, %c0_108, %c0_109] : memref<8x8x32xf32, #tpu.memory_space<vmem>>, vector<1x8x32xf32>
    %165 = vector.shape_cast %164 : vector<1x8x32xf32> to vector<8x32xf32>
    %cst_110 = arith.constant dense<0.000000e+00> : vector<8x32xf32>
    %166 = tpu.matmul %158, %8, %cst_110 {dimension_numbers = #tpu.dot_dimension_numbers<[1], [0], [0], [1], [0, 0, 1, 1], [], []>} : vector<8x8xf32>, vector<8x32xf32>, vector<8x32xf32> -> vector<8x32xf32>
    %167 = arith.addf %166, %165 : vector<8x32xf32>
    %168 = math.tanh %167 : vector<8x32xf32>
    %cst_111 = arith.constant dense<0.000000e+00> : vector<8x32xf32>
    %169 = tpu.matmul %168, %11, %cst_111 {dimension_numbers = #tpu.dot_dimension_numbers<[1], [0], [0], [1], [0, 0, 1, 1], [], []>} : vector<8x32xf32>, vector<32x32xf32>, vector<8x32xf32> -> vector<8x32xf32>
    %170 = arith.addf %169, %52 : vector<8x32xf32>
    %171 = math.tanh %170 : vector<8x32xf32>
    %cst_112 = arith.constant dense<0.000000e+00> : vector<8x8xf32>
    %172 = tpu.matmul %171, %13, %cst_112 {dimension_numbers = #tpu.dot_dimension_numbers<[1], [0], [0], [1], [0, 0, 1, 1], [], []>} : vector<8x32xf32>, vector<32x8xf32>, vector<8x8xf32> -> vector<8x8xf32>
    %173 = arith.addf %172, %54 : vector<8x8xf32>
    %cst_113 = arith.constant 5.000000e-02 : f32
    %174 = vector.broadcast %cst_113 : f32 to vector<8x8xf32>
    %175 = arith.mulf %174, %173 : vector<8x8xf32>
    %176 = arith.addf %158, %175 : vector<8x8xf32>
    %177 = arith.index_cast %c6_i32 : i32 to index
    %c0_114 = arith.constant 0 : index
    %c0_115 = arith.constant 0 : index
    %178 = vector.load %arg30[%177, %c0_114, %c0_115] : memref<8x8x8xf32, #tpu.memory_space<vmem>>, vector<1x8x8xf32>
    %179 = vector.shape_cast %178 : vector<1x8x8xf32> to vector<8x8xf32>
    %180 = vector.shape_cast %176 : vector<8x8xf32> to vector<1x8x8xf32>
    tpu.vector_store %arg30[%177, %c0_114, %c0_115], %180 {strides = array<i32>} : memref<8x8x8xf32, #tpu.memory_space<vmem>>, vector<1x8x8xf32>,
    %c7_i32 = arith.constant 7 : i32
    %181 = arith.index_cast %c7_i32 : i32 to index
    %c0_116 = arith.constant 0 : index
    %c0_117 = arith.constant 0 : index
    %182 = vector.load %arg29[%181, %c0_116, %c0_117] : memref<8x8x32xf32, #tpu.memory_space<vmem>>, vector<1x8x32xf32>
    %183 = vector.shape_cast %182 : vector<1x8x32xf32> to vector<8x32xf32>
    %cst_118 = arith.constant dense<0.000000e+00> : vector<8x32xf32>
    %184 = tpu.matmul %176, %8, %cst_118 {dimension_numbers = #tpu.dot_dimension_numbers<[1], [0], [0], [1], [0, 0, 1, 1], [], []>} : vector<8x8xf32>, vector<8x32xf32>, vector<8x32xf32> -> vector<8x32xf32>
    %185 = arith.addf %184, %183 : vector<8x32xf32>
    %186 = math.tanh %185 : vector<8x32xf32>
    %cst_119 = arith.constant dense<0.000000e+00> : vector<8x32xf32>
    %187 = tpu.matmul %186, %11, %cst_119 {dimension_numbers = #tpu.dot_dimension_numbers<[1], [0], [0], [1], [0, 0, 1, 1], [], []>} : vector<8x32xf32>, vector<32x32xf32>, vector<8x32xf32> -> vector<8x32xf32>
    %188 = arith.addf %187, %52 : vector<8x32xf32>
    %189 = math.tanh %188 : vector<8x32xf32>
    %cst_120 = arith.constant dense<0.000000e+00> : vector<8x8xf32>
    %190 = tpu.matmul %189, %13, %cst_120 {dimension_numbers = #tpu.dot_dimension_numbers<[1], [0], [0], [1], [0, 0, 1, 1], [], []>} : vector<8x32xf32>, vector<32x8xf32>, vector<8x8xf32> -> vector<8x8xf32>
    %191 = arith.addf %190, %54 : vector<8x8xf32>
    %cst_121 = arith.constant 5.000000e-02 : f32
    %192 = vector.broadcast %cst_121 : f32 to vector<8x8xf32>
    %193 = arith.mulf %192, %191 : vector<8x8xf32>
    %194 = arith.addf %176, %193 : vector<8x8xf32>
    %195 = arith.index_cast %c7_i32 : i32 to index
    %c0_122 = arith.constant 0 : index
    %c0_123 = arith.constant 0 : index
    %196 = vector.load %arg30[%195, %c0_122, %c0_123] : memref<8x8x8xf32, #tpu.memory_space<vmem>>, vector<1x8x8xf32>
    %197 = vector.shape_cast %196 : vector<1x8x8xf32> to vector<8x8xf32>
    %198 = vector.shape_cast %194 : vector<8x8xf32> to vector<1x8x8xf32>
    tpu.vector_store %arg30[%195, %c0_122, %c0_123], %198 {strides = array<i32>} : memref<8x8x8xf32, #tpu.memory_space<vmem>>, vector<1x8x8xf32>,
    %c8_i32 = arith.constant 8 : i32
    %c0_124 = arith.constant 0 : index
    %c0_125 = arith.constant 0 : index
    %c0_126 = arith.constant 0 : index
    %199 = vector.load %arg30[%c0_124, %c0_125, %c0_126] : memref<8x8x8xf32, #tpu.memory_space<vmem>>, vector<8x8x8xf32>
    %200 = vector.shape_cast %199 : vector<8x8x8xf32> to vector<64x8xf32>
    %cst_127 = arith.constant dense<0.000000e+00> : vector<64x32xf32>
    %201 = tpu.matmul %200, %15, %cst_127 {dimension_numbers = #tpu.dot_dimension_numbers<[1], [0], [0], [1], [0, 0, 1, 1], [], []>} : vector<64x8xf32>, vector<8x32xf32>, vector<64x32xf32> -> vector<64x32xf32>
    %202 = vector.broadcast %16 : vector<1x32xf32> to vector<64x32xf32>
    %203 = arith.addf %201, %202 : vector<64x32xf32>
    %204 = math.tanh %203 : vector<64x32xf32>
    %cst_128 = arith.constant dense<0.000000e+00> : vector<64x32xf32>
    %205 = tpu.matmul %204, %17, %cst_128 {dimension_numbers = #tpu.dot_dimension_numbers<[1], [0], [0], [1], [0, 0, 1, 1], [], []>} : vector<64x32xf32>, vector<32x32xf32>, vector<64x32xf32> -> vector<64x32xf32>
    %206 = vector.broadcast %18 : vector<1x32xf32> to vector<64x32xf32>
    %207 = arith.addf %205, %206 : vector<64x32xf32>
    %208 = math.tanh %207 : vector<64x32xf32>
    %cst_129 = arith.constant dense<0.000000e+00> : vector<64x4xf32>
    %209 = tpu.matmul %208, %19, %cst_129 {dimension_numbers = #tpu.dot_dimension_numbers<[1], [0], [0], [1], [0, 0, 1, 1], [], []>} : vector<64x32xf32>, vector<32x4xf32>, vector<64x4xf32> -> vector<64x4xf32>
    %210 = vector.broadcast %20 : vector<1x4xf32> to vector<64x4xf32>
    %211 = arith.addf %209, %210 : vector<64x4xf32>
    %212 = vector.shape_cast %211 : vector<64x4xf32> to vector<8x8x4xf32>
    %c0_130 = arith.constant 0 : index
    %c0_131 = arith.constant 0 : index
    %c0_132 = arith.constant 0 : index
    %213 = vector.load %arg25[%c0_130, %c0_131, %c0_132] : memref<8x8x4xf32, #tpu.memory_space<vmem>>, vector<8x8x4xf32>
    tpu.vector_store %arg25[%c0_130, %c0_131, %c0_132], %212 {strides = array<i32>} : memref<8x8x4xf32, #tpu.memory_space<vmem>>, vector<8x8x4xf32>,
    %c0_133 = arith.constant 0 : index
    %c0_134 = arith.constant 0 : index
    %c0_135 = arith.constant 0 : index
    %214 = vector.load %arg26[%c0_133, %c0_134, %c0_135] : memref<8x8x8xf32, #tpu.memory_space<vmem>>, vector<8x8x8xf32>
    tpu.vector_store %arg26[%c0_133, %c0_134, %c0_135], %199 {strides = array<i32>} : memref<8x8x8xf32, #tpu.memory_space<vmem>>, vector<8x8x8xf32>,
    return
  }
  func.func @transform_0(%arg0: i32) -> (i32, i32, i32) {
    %c0_i32 = arith.constant 0 : i32
    %c0_i32_0 = arith.constant 0 : i32
    %c0_i32_1 = arith.constant 0 : i32
    return %c0_i32, %arg0, %c0_i32_0 : i32, i32, i32
  }
  func.func @transform_1(%arg0: i32) -> (i32, i32) {
    %c0_i32 = arith.constant 0 : i32
    %c0_i32_0 = arith.constant 0 : i32
    return %arg0, %c0_i32 : i32, i32
  }
  func.func @transform_2(%arg0: i32) -> (i32, i32) {
    %c0_i32 = arith.constant 0 : i32
    %c0_i32_0 = arith.constant 0 : i32
    return %arg0, %c0_i32 : i32, i32
  }
  func.func @transform_3(%arg0: i32) -> (i32, i32) {
    %c0_i32 = arith.constant 0 : i32
    %c0_i32_0 = arith.constant 0 : i32
    %c0_i32_1 = arith.constant 0 : i32
    return %c0_i32, %c0_i32_0 : i32, i32
  }
  func.func @transform_4(%arg0: i32) -> (i32, i32) {
    %c0_i32 = arith.constant 0 : i32
    %c0_i32_0 = arith.constant 0 : i32
    %c0_i32_1 = arith.constant 0 : i32
    return %c0_i32, %c0_i32_0 : i32, i32
  }
  func.func @transform_5(%arg0: i32) -> (i32, i32) {
    %c0_i32 = arith.constant 0 : i32
    %c0_i32_0 = arith.constant 0 : i32
    %c0_i32_1 = arith.constant 0 : i32
    return %c0_i32, %c0_i32_0 : i32, i32
  }
  func.func @transform_6(%arg0: i32) -> (i32, i32) {
    %c0_i32 = arith.constant 0 : i32
    %c0_i32_0 = arith.constant 0 : i32
    %c0_i32_1 = arith.constant 0 : i32
    return %c0_i32, %c0_i32_0 : i32, i32
  }
  func.func @transform_7(%arg0: i32) -> (i32, i32) {
    %c0_i32 = arith.constant 0 : i32
    %c0_i32_0 = arith.constant 0 : i32
    %c0_i32_1 = arith.constant 0 : i32
    return %c0_i32, %c0_i32_0 : i32, i32
  }
  func.func @transform_8(%arg0: i32) -> (i32, i32) {
    %c0_i32 = arith.constant 0 : i32
    %c0_i32_0 = arith.constant 0 : i32
    %c0_i32_1 = arith.constant 0 : i32
    return %c0_i32, %c0_i32_0 : i32, i32
  }
  func.func @transform_9(%arg0: i32) -> (i32, i32) {
    %c0_i32 = arith.constant 0 : i32
    %c0_i32_0 = arith.constant 0 : i32
    %c0_i32_1 = arith.constant 0 : i32
    return %c0_i32, %c0_i32_0 : i32, i32
  }
  func.func @transform_10(%arg0: i32) -> (i32, i32) {
    %c0_i32 = arith.constant 0 : i32
    %c0_i32_0 = arith.constant 0 : i32
    %c0_i32_1 = arith.constant 0 : i32
    return %c0_i32, %c0_i32_0 : i32, i32
  }
  func.func @transform_11(%arg0: i32) -> (i32, i32) {
    %c0_i32 = arith.constant 0 : i32
    %c0_i32_0 = arith.constant 0 : i32
    %c0_i32_1 = arith.constant 0 : i32
    return %c0_i32, %c0_i32_0 : i32, i32
  }
  func.func @transform_12(%arg0: i32) -> (i32, i32) {
    %c0_i32 = arith.constant 0 : i32
    %c0_i32_0 = arith.constant 0 : i32
    %c0_i32_1 = arith.constant 0 : i32
    return %c0_i32, %c0_i32_0 : i32, i32
  }
  func.func @transform_13(%arg0: i32) -> (i32, i32) {
    %c0_i32 = arith.constant 0 : i32
    %c0_i32_0 = arith.constant 0 : i32
    %c0_i32_1 = arith.constant 0 : i32
    return %c0_i32, %c0_i32_0 : i32, i32
  }
  func.func @transform_14(%arg0: i32) -> (i32, i32) {
    %c0_i32 = arith.constant 0 : i32
    %c0_i32_0 = arith.constant 0 : i32
    %c0_i32_1 = arith.constant 0 : i32
    return %c0_i32, %c0_i32_0 : i32, i32
  }
  func.func @transform_15(%arg0: i32) -> (i32, i32) {
    %c0_i32 = arith.constant 0 : i32
    %c0_i32_0 = arith.constant 0 : i32
    %c0_i32_1 = arith.constant 0 : i32
    return %c0_i32, %c0_i32_0 : i32, i32
  }
  func.func @transform_16(%arg0: i32) -> (i32, i32) {
    %c0_i32 = arith.constant 0 : i32
    %c0_i32_0 = arith.constant 0 : i32
    %c0_i32_1 = arith.constant 0 : i32
    return %c0_i32, %c0_i32_0 : i32, i32
  }
  func.func @transform_17(%arg0: i32) -> (i32, i32) {
    %c0_i32 = arith.constant 0 : i32
    %c0_i32_0 = arith.constant 0 : i32
    %c0_i32_1 = arith.constant 0 : i32
    return %c0_i32, %c0_i32_0 : i32, i32
  }
  func.func @transform_18(%arg0: i32) -> (i32, i32) {
    %c0_i32 = arith.constant 0 : i32
    %c0_i32_0 = arith.constant 0 : i32
    %c0_i32_1 = arith.constant 0 : i32
    return %c0_i32, %c0_i32_0 : i32, i32
  }
  func.func @transform_19(%arg0: i32) -> (i32, i32) {
    %c0_i32 = arith.constant 0 : i32
    %c0_i32_0 = arith.constant 0 : i32
    %c0_i32_1 = arith.constant 0 : i32
    return %c0_i32, %c0_i32_0 : i32, i32
  }
  func.func @transform_20(%arg0: i32) -> (i32, i32) {
    %c0_i32 = arith.constant 0 : i32
    %c0_i32_0 = arith.constant 0 : i32
    %c0_i32_1 = arith.constant 0 : i32
    return %c0_i32, %c0_i32_0 : i32, i32
  }
  func.func @transform_21(%arg0: i32) -> (i32, i32) {
    %c0_i32 = arith.constant 0 : i32
    %c0_i32_0 = arith.constant 0 : i32
    %c0_i32_1 = arith.constant 0 : i32
    return %c0_i32, %c0_i32_0 : i32, i32
  }
  func.func @transform_22(%arg0: i32) -> (i32, i32) {
    %c0_i32 = arith.constant 0 : i32
    %c0_i32_0 = arith.constant 0 : i32
    %c0_i32_1 = arith.constant 0 : i32
    return %c0_i32, %c0_i32_0 : i32, i32
  }
  func.func @transform_23(%arg0: i32) -> (i32, i32) {
    %c0_i32 = arith.constant 0 : i32
    %c0_i32_0 = arith.constant 0 : i32
    %c0_i32_1 = arith.constant 0 : i32
    return %c0_i32, %c0_i32_0 : i32, i32
  }
  func.func @transform_24(%arg0: i32) -> (i32, i32, i32) {
    %c0_i32 = arith.constant 0 : i32
    %c0_i32_0 = arith.constant 0 : i32
    %c0_i32_1 = arith.constant 0 : i32
    return %c0_i32, %arg0, %c0_i32_0 : i32, i32, i32
  }
  func.func @transform_25(%arg0: i32) -> (i32, i32, i32) {
    %c0_i32 = arith.constant 0 : i32
    %c0_i32_0 = arith.constant 0 : i32
    %c0_i32_1 = arith.constant 0 : i32
    return %c0_i32, %arg0, %c0_i32_0 : i32, i32, i32
  }
  func.func @transform_26(%arg0: i32) -> (i32, i32) {
    %c0_i32 = arith.constant 0 : i32
    %c0_i32_0 = arith.constant 0 : i32
    return %arg0, %c0_i32 : i32, i32
  }
  func.func @transform_27(%arg0: i32) -> (i32, i32) {
    %c0_i32 = arith.constant 0 : i32
    %c0_i32_0 = arith.constant 0 : i32
    return %arg0, %c0_i32 : i32, i32
  }
}

</mosaic_0001>

<bundles_post_ra>
// kernel: tpu_custom_call.1
= control target key start
LH: loop header
LB: loop body
LE: loop exit
PB: predicated region body
PF: predicated region fallthrough
CT: control target
= control target key end

     0   :  { %s5567_s0 = inlined_call_operand.vmem [shape: f32[8,16,8], index: 0, kind: input, shape index: {}]   ;;  %s5568_s1 = inlined_call_operand.vmem [shape: f32[16,8], index: 1, kind: input, shape index: {}]   ;;  %s5569_s2 = inlined_call_operand.vmem [shape: f32[16,4], index: 2, kind: input, shape index: {}]   ;;  %s5570_s3 = inlined_call_operand.vmem [shape: f32[4,32], index: 3, kind: input, shape index: {}]   ;;  %s5571_s4 = inlined_call_operand.vmem [shape: f32[1,32], index: 4, kind: input, shape index: {}]   ;;  %s5572_s5 = inlined_call_operand.vmem [shape: f32[32,32], index: 5, kind: input, shape index: {}]   ;;  %s5573_s6 = inlined_call_operand.vmem [shape: f32[1,32], index: 6, kind: input, shape index: {}]   ;;  %s5574_s7 = inlined_call_operand.vmem [shape: f32[32,8], index: 7, kind: input, shape index: {}]   ;;  %s5575_s8 = inlined_call_operand.vmem [shape: f32[1,8], index: 8, kind: input, shape index: {}]   ;;  %s5576_s9 = inlined_call_operand.vmem [shape: f32[32,8], index: 9, kind: input, shape index: {}]   ;;  %s5577_s10 = inlined_call_operand.vmem [shape: f32[1,8], index: 10, kind: input, shape index: {}]   ;;  %s5578_s11 = inlined_call_operand.vmem [shape: f32[8,32], index: 11, kind: input, shape index: {}]   ;;  %s5579_s12 = inlined_call_operand.vmem [shape: f32[8,32], index: 12, kind: input, shape index: {}]   ;;  %s5580_s13 = inlined_call_operand.vmem [shape: f32[1,32], index: 13, kind: input, shape index: {}]   ;;  %s5581_s14 = inlined_call_operand.vmem [shape: f32[32,32], index: 14, kind: input, shape index: {}]   ;;  %s5582_s15 = inlined_call_operand.vmem [shape: f32[1,32], index: 15, kind: input, shape index: {}]   ;;  %s5583_s16 = inlined_call_operand.vmem [shape: f32[32,8], index: 16, kind: input, shape index: {}]   ;;  %s5584_s17 = inlined_call_operand.vmem [shape: f32[1,8], index: 17, kind: input, shape index: {}]   ;;  %s5585_s18 = inlined_call_operand.vmem [shape: f32[8,32], index: 18, kind: input, shape index: {}]   ;;  %s5586_s19 = inlined_call_operand.vmem [shape: f32[1,32], index: 19, kind: input, shape index: {}]   ;;  %s5587_s20 = inlined_call_operand.vmem [shape: f32[32,32], index: 20, kind: input, shape index: {}]   ;;  %s5588_s21 = inlined_call_operand.vmem [shape: f32[1,32], index: 21, kind: input, shape index: {}]   ;;  %s5589_s22 = inlined_call_operand.vmem [shape: f32[32,4], index: 22, kind: input, shape index: {}]   ;;  %s5590_s23 = inlined_call_operand.vmem [shape: f32[1,4], index: 23, kind: input, shape index: {}]   ;;  %s5591_s24 = inlined_call_operand.vmem [shape: f32[8,16,4], index: 24, kind: output, shape index: {0}]   ;;  %s5592_s25 = inlined_call_operand.vmem [shape: f32[8,16,8], index: 25, kind: output, shape index: {1}]   ;;  %s5593_s26 = inlined_call_operand.vmem [shape: f32[16,8], index: 26, kind: output, shape index: {2}]   ;;  %s5594_s27 = inlined_call_operand.vmem [shape: f32[16,8], index: 27, kind: output, shape index: {3}]  }
   0x1   :  { %5604 = sst [smem:[#allocation11_spill]] %s5567_s0 }
   0x2   :  { %5605 = sst [smem:[#allocation12_spill]] %s5568_s1 }
   0x3   :  { %5606 = sst [smem:[#allocation13_spill]] %s5569_s2 }
   0x4   :  { %5607 = sst [smem:[#allocation14_spill]] %s5570_s3 }
   0x5   :  { %5608 = sst [smem:[#allocation15_spill]] %s5571_s4 }
   0x6   :  { %5609 = sst [smem:[#allocation16_spill]] %s5572_s5 }
   0x7   :  { %5610 = sst [smem:[#allocation17_spill]] %s5573_s6 }
   0x8   :  { %5611 = sst [smem:[#allocation18_spill]] %s5574_s7 }
   0x9   :  { %5612 = sst [smem:[#allocation19_spill]] %s5575_s8 }
   0xa   :  { %5613 = sst [smem:[#allocation20_spill]] %s5576_s9 }
   0xb   :  { %5614 = sst [smem:[#allocation21_spill]] %s5577_s10 }
   0xc   :  { %5615 = sst [smem:[#allocation22_spill]] %s5578_s11 }
   0xd   :  { %5616 = sst [smem:[#allocation23_spill]] %s5591_s24 }
   0xe   :  { %5617 = sst [smem:[#allocation24_spill]] %s5592_s25 }
   0xf   :  { %s5003_s7 = smov 0   ;;  %s5005_s4 = smov 0  }
  0x10   :  { %s5007_s8 = smov 0  }
  0x11 LB: > { %5618 = sst [smem:[#allocation7_spill]] %s4854_s4  ;;  %s5019_s30 = sadd.s32 4294967295, %s4858_s8   ;;  %s4858_s8 = sphi %s5007_s8, %s5640_s8   ;;  %s4854_s4 = sphi %s5005_s4, %s5642_s4   ;;  %s4850_s7 = sphi %s5003_s7, %s5641_s7  }
  0x12   : > { %5619 = sst [smem:[#allocation8_spill]] %s5019_s30  ;;  %s5022_s9 = sadd.s32 1, %s4858_s8  }
  0x13   : > { %5620 = sst [smem:[#allocation9_spill]] %s5022_s9  ;;  %s42_s5 = ssub.s32 %s4858_s8, %s5022_s9 }
  0x14   : > { %s45_s28 = sadd.s32 1, %s4854_s4  ;;  %p43_p0 = scmp.eq.s32.totalorder %s42_s5, 0 }
  0x15   : > { %p52_p1 = scmp.ne.s32.totalorder %s4854_s4, %s4850_s7  ;;  %p53_p2 = scmp.eq.s32.totalorder %s4858_s8, 0 }
  0x16   : > { %p575_p3 = scmp.eq.s32.totalorder %s5019_s30, 1  ;;  %p4042_p6 = scmp.ge.s32.totalorder %s4858_s8, 2 }
  0x17   : > { %s5032_s0 = scalar_select %p43_p0, %s4854_s4, %s45_s28  }
  0x18   : > { %p54_p4 = por %p53_p2, %p52_p1  ;;  %p5034_p5 = por %p575_p3, %p52_p1 }
  0x19   : > { %5621 = sst [smem:[#allocation10_spill]] %s5032_s0  ;;  %738 = sbr.rel (%p4042_p6) target bundleno = 46 (0x2e), region = 100 }
  0x20   : > { %741 = sbr.rel (!%p54_p4) target bundleno = 46 (0x2e), region = 104  ;;  %s743_s29 = sand.u32 (%p54_p4), 1, %s4854_s4  }
  0x21   : > { %s4044_s1 = sshll.u32 (%p54_p4), %s4858_s8, 3  ;;  %s4043_s6 = sshll.u32 (%p54_p4), %s743_s29, 6 }
  0x22   : > { %s5623_s3 = sld [smem:[#allocation11_spill]] (%p54_p4)  ;;  %s745_s28 = scalar_lea.vmem (%p54_p4), [#allocation4], %s4043_s6 }
  0x28   : > { %s747_s5 = scalar_lea.vmem %s5623_s3, %s4044_s1 }
  0x29   : > { %v789_v0 = vld [vmem:[%s747_s5] sm:$0xff]  ;;  %v791_v1 = vld [vmem:[%s747_s5 + $0x10] sm:$0xff] }
  0x2a   : > { %v793_v2 = vld [vmem:[%s747_s5 + $0x20] sm:$0xff]  ;;  %790 = vst [vmem:[%s745_s28] sm:$0xff] %v789_v0  ;;  %792 = vst [vmem:[%s745_s28 + $0x8] sm:$0xff] %v791_v1  ;;  %v795_v3 = vld [vmem:[%s747_s5 + $0x30] sm:$0xff] }
  0x2b   : > { %794 = vst [vmem:[%s745_s28 + $0x10] sm:$0xff] %v793_v2  ;;  %v797_v4 = vld [vmem:[%s747_s5 + $0x40] sm:$0xff]  ;;  %v799_v5 = vld [vmem:[%s747_s5 + $0x50] sm:$0xff]  ;;  %796 = vst [vmem:[%s745_s28 + $0x18] sm:$0xff] %v795_v3 }
  0x2c   : > { %798 = vst [vmem:[%s745_s28 + $0x20] sm:$0xff] %v797_v4  ;;  %800 = vst [vmem:[%s745_s28 + $0x28] sm:$0xff] %v799_v5  ;;  %v801_v6 = vld [vmem:[%s747_s5 + $0x60] sm:$0xff]  ;;  %v803_v7 = vld [vmem:[%s747_s5 + $0x70] sm:$0xff] }
  0x2d   : > { %802 = vst [vmem:[%s745_s28 + $0x30] sm:$0xff] %v801_v6  ;;  %804 = vst [vmem:[%s745_s28 + $0x38] sm:$0xff] %v803_v7 }
  0x2e PF: > { %p4045_p7 = scmp.ge.s32.totalorder %s4858_s8, 1  ;;  %p823_p8 = scmp.lt.s32.totalorder %s4858_s8, 3 }
  0x30   : > { %p824_p9 = pnand %p4045_p7, %p823_p8 }
  0x31   : > { %s5624_s6 = sld [smem:[#allocation14_spill]] (!%p824_p9)  ;;  %vm989_vm0 = vcmask (!%p824_p9), 1043456   ;;  %p920_p10 = scmp.lt.s32.totalorder (!%p824_p9), %s5019_s30, 1  ;;  %v4860_v9 = vmov (!%p824_p9), 0.0   ;;  %vm4861_vm1 = vmmov (!%p824_p9), 0   ;;  %vm985_vm2 = vcmask (!%p824_p9), 31744  }
  0x32   : > { %827 = sbr.rel (%p824_p9) target bundleno = 6787 (0x1a83), region = 150  ;;  %4285 = vmatprep.subr.mxu0 (!%p824_p9), %v4860_v9  ;;  %4287 = vmatprep.mubr.msk.f32.mxu0 (!%p824_p9), %vm4861_vm1, %v4860_v9  ;;  %s5625_s5 = sld [smem:[#allocation13_spill]] (!%p824_p9)  ;;  %v4862_v14 = vmov (!%p824_p9), 0.0|0.0   ;;  %vm1070_vm3 = vcmask (!%p824_p9), 261120   ;;  %v954_v40 = vld [vmem:[%s5579_s12] sm:$0xff] (!%p824_p9)  ;;  %vm1306_vm4 = vcmask (!%p824_p9), 64512  }
  0x33   : > { %4298 = vmatprep.mubr.msk.f32.mxu1 (!%p824_p9), %vm4861_vm1, %v4860_v9  ;;  %4607 = vmatprep.subr.bf16.mxu1 (!%p824_p9), %v4862_v14  ;;  %s5627_s0 = sld [smem:[#allocation15_spill]] (!%p824_p9)  ;;  %s5628_s29 = sld [smem:[#allocation18_spill]] (!%p824_p9)  ;;  %v5171_v58 = vld [vmem:[%s5580_s13] ss:$0 sm:$0xff] (!%p824_p9)  ;;  %v957_v0 = vld [vmem:[%s5581_s14 + $0x8] sm:$0xff] (!%p824_p9)  ;;  %v958_v1 = vld [vmem:[%s5581_s14 + $0x10] sm:$0xff] (!%p824_p9) }
  0x34   : > { %s5629_s4 = sld [smem:[#allocation20_spill]] (!%p824_p9)  ;;  %s5632_s1 = sld [smem:[#allocation22_spill]] (!%p824_p9)  ;;  %v956_v63 = vld [vmem:[%s5581_s14] sm:$0xff] (!%p824_p9)  ;;  %v959_v3 = vld [vmem:[%s5581_s14 + $0x18] sm:$0xff] (!%p824_p9)  ;;  %v962_v6 = vld [vmem:[%s5583_s16 + $0x8] sm:$0xff] (!%p824_p9) }
  0x35   : > { %s5633_s24 = sld [smem:[#allocation19_spill]] (!%p824_p9)  ;;  %v5186_v2 = vpack.c.bf16 (!%p824_p9), %v957_v0, %v956_v63  ;;  %v5192_v4 = vpack.c.bf16 (!%p824_p9), %v959_v3, %v958_v1  ;;  %v961_v5 = vld [vmem:[%s5583_s16] sm:$0xff] (!%p824_p9) }
  0x37   : > { %v936_v8 = vld [vmem:[%s5624_s6] sm:$0xf] (!%p824_p9)  ;;  %s5626_s6 = sld [smem:[#allocation16_spill]] (!%p824_p9) }
  0x38   : > { %4286 = vmatpush3.msk.msra.mxu0 (!%p824_p9), %vm989_vm0, %v936_v8  ;;  %v5204_v8 = vpack.c.bf16 (!%p824_p9), %v962_v6, %v961_v5 }
  0x39   : > { %s921_s11 = scalar_select %p920_p10, %s5019_s30, 1  ;;  %4613 = vmatprep.subr.bf16.mxu0 %v4862_v14  ;;  %v4053_v18 = vld [vmem:[%s5627_s0] ss:$0 sm:$0xff]  ;;  %v944_v24 = vld [vmem:[%s5628_s29 + $0x8] sm:$0xff]  ;;  %v945_v28 = vld [vmem:[%s5628_s29 + $0x10] sm:$0xff] }
  0x3a   : > { %v943_v23 = vld [vmem:[%s5628_s29] sm:$0xff]  ;;  %s5630_s9 = smov %s5629_s4  ;;  %v946_v29 = vld [vmem:[%s5628_s29 + $0x18] sm:$0xff]  ;;  %s5631_s30 = sld [smem:[#allocation17_spill]] }
  0x3b   : > { %s5056_s8 = sshll.u32 %s921_s11, 3  ;;  %v948_v25 = vld [vmem:[%s5629_s4] sm:$0xff]  ;;  %v4614_v26 = vpack.c.bf16 %v944_v24, %v943_v23  ;;  %v949_v27 = vld [vmem:[%s5630_s9 + $0x8] sm:$0xff]  ;;  %v950_v31 = vld [vmem:[%s5630_s9 + $0x10] sm:$0xff]  ;;  %v4617_v33 = vpack.c.bf16 %v946_v29, %v945_v28 }
  0x3c   : > { %s927_s28 = scalar_lea.vmem %s5625_s5, %s5056_s8  ;;  %v4620_v30 = vpack.c.bf16 %v949_v27, %v948_v25  ;;  %v951_v32 = vld [vmem:[%s5630_s9 + $0x18] sm:$0xff]  ;;  %v5130_v41 = vld [vmem:[%s5632_s1] sm:$0xff]  ;;  %s931_s5 = scalar_lea.vmem %s5593_s26, %s5056_s8 }
  0x3d   : > { %v978_v10 = vld [vmem:[%s927_s28] sm:$0xff]  ;;  %v939_v12 = vld [vmem:[%s5626_s6 + $0x8] sm:$0xff]  ;;  %v940_v13 = vld [vmem:[%s5626_s6 + $0x10] sm:$0xff]  ;;  %v4623_v34 = vpack.c.bf16 %v951_v32, %v950_v31  ;;  %s935_s9 = scalar_lea.vmem %s5594_s27, %s5056_s8 }
  0x3e   : > { %4288 = vmatmul.mubr.msk.f32.vlgmr.msra.gmra.mrb[0].mxu0 %vm985_vm2, %v978_v10  ;;  %v938_v11 = vld [vmem:[%s5626_s6] sm:$0xff]  ;;  %v941_v16 = vld [vmem:[%s5626_s6 + $0x18] sm:$0xff]  ;;  %s830_s6 = sand.u32 1, %s4850_s7  }
  0x3f   : > { %4309 = vmatprep.mubr.msk.f32.mxu0 %vm4861_vm1, %v4860_v9  ;;  %v4608_v15 = vpack.c.bf16 %v939_v12, %v938_v11  ;;  %v4611_v17 = vpack.c.bf16 %v941_v16, %v940_v13  ;;  %4615 = vmatpush3.bf16.msra.mxu0 %v4614_v26  ;;  %s5122_s3 = sshll.u32 %s830_s6, 6  ;;  %v4058_v44 = vld [vmem:[%s5633_s24] ss:$0 sm:$0xff]  ;;  %s5634_s6 = sld [smem:[#allocation21_spill]] }
  0x40   : > { %4616 = vmatprep.subr.bf16.mxu0 %v4862_v14  ;;  %v4056_v35 = vld [vmem:[%s5631_s30] ss:$0 sm:$0xff]  ;;  %s5133_s11 = scalar_lea.vmem [#allocation4], %s5122_s3  ;;  %s5635_s24 = sld [smem:[#allocation12_spill]] }
  0x41   : > { %4609 = vmatpush3.bf16.msra.mxu1 %v4608_v15  ;;  %v1309_v42 = vld [vmem:[%s5133_s11] sm:$0xff]  ;;  %v1310_v43 = vld [vmem:[%s5133_s11 + $0x8] sm:$0xff]  ;;  %v1311_v7 = vld [vmem:[%s5133_s11 + $0x10] sm:$0xff]  ;;  %s5279_s1 = scalar_lea.vmem [#allocation6], %s5122_s3 }
  0x42   : > { %4610 = vmatprep.subr.bf16.mxu1 %v4862_v14  ;;  %v1312_v16 = vld [vmem:[%s5133_s11 + $0x18] sm:$0xff]  ;;  %v5239_v24 = vld [vmem:[%s5582_s15] ss:$0 sm:$0xff] }
  0x43   : > { %4618 = vmatpush3.bf16.msra.mxu0 %v4617_v33  ;;  %v1316_v23 = vld [vmem:[%s5133_s11 + $0x38] sm:$0xff] }
  0x44   : > { %4323 = vmatprep.subr.mxu0 %v954_v40 }
  0x45   : > { %4612 = vmatpush3.bf16.msra.mxu1 %v4611_v17  ;;  %v4060_v45 = vld [vmem:[%s5634_s6] ss:$0 sm:$0xff] }
  0x46   : > { %4619 = vmatprep.subr.bf16.mxu1 %v4862_v14  ;;  %s923_s25 = scalar_lea.vmem %s5635_s24, %s5056_s8  ;;  %v1313_v17 = vld [vmem:[%s5133_s11 + $0x20] sm:$0xff]  ;;  %s5637_s24 = sld [smem:[#allocation23_spill]] (%p5034_p5) }
  0x47   : > { %v1303_v54 = vld [vmem:[%s923_s25] sm:$0xff] }
 0x111   : > { %v1059_v19 = vpop.f32.mrb[0].mxu0 }
 0x112   : > { %v1060_v20 = vadd.f32 %v4053_v18, %v1059_v19  ;;  %v4289_v21 = vpop.f32.mrb[1].mxu0  ;;  %v1314_v18 = vld [vmem:[%s5133_s11 + $0x28] sm:$0xff]  ;;  %v963_v19 = vld [vmem:[%s5583_s16 + $0x10] sm:$0xff] }
 0x113   : > { %v1315_v21 = vld [vmem:[%s5133_s11 + $0x30] sm:$0xff]  ;;  %s5509_s11 = scalar_lea.vmem [#allocation5], %s5122_s3  ;;  %s5636_s3 = sld [smem:[#allocation8_spill]] (%p5034_p5) }
 0x114   : > { %4766 = vtanh.f32 %v1060_v20  ;;  %v964_v20 = vld [vmem:[%s5583_s16 + $0x18] sm:$0xff] }
 0x119   : > { %s4126_s28 = sshll.u32 (%p5034_p5), %s5636_s3, 3 }
 0x11a   : > { %s3751_s25 = scalar_lea.vmem (%p5034_p5), %s5637_s24, %s4126_s28 }
 0x11e   : > { %v4767_v22 = vpop.eup %4766 }
 0x11f   : > { %4299 = vmatmul.mubr.msk.f32.vlgmr.msra.gmra.mrb[0].mxu1 %vm1070_vm3, %v4767_v22  ;;  %v5227_v22 = vpack.c.bf16 %v964_v20, %v963_v19 }
 0x120   : > { %4320 = vmatprep.mubr.msk.f32.mxu1 %vm4861_vm1, %v4860_v9  ;;  %4621 = vmatpush3.bf16.msra.mxu1 %v4620_v30 }
 0x121   : > { %4622 = vmatprep.subr.bf16.mxu1 %v4862_v14 }
 0x124   : > { %4624 = vmatpush3.bf16.msra.mxu1 %v4623_v34 }
 0x125   : > { %4337 = vmatprep.subr.mxu1 %v4860_v9 }
 0x1f2   : > { %v1140_v36 = vpop.f32.mrb[0].mxu1 }
 0x1f3   : > { %v1141_v37 = vadd.f32 %v4056_v35, %v1140_v36  ;;  %v4300_v38 = vpop.f32.mrb[1].mxu1 }
 0x1f5   : > { %4768 = vtanh.f32 %v1141_v37 }
 0x1ff   : > { %v4769_v39 = vpop.eup %4768 }
 0x200   : > { %4310 = vmatmul.mubr.msk.f32.vlgmr.msra.gmra.mrb[2].mxu0 %vm1070_vm3, %v4769_v39  ;;  %4321 = vmatmul.mubr.msk.f32.vlgmr.msra.gmra.mrb[2].mxu1 %vm1070_vm3, %v4769_v39 }
 0x201   : > { %4339 = vmatprep.mubr.msk.f32.mxu1 %vm4861_vm1, %v4860_v9  ;;  %4338 = vmatpush3.msra.mxu1 %v5130_v41 }
 0x202   : > { %4324 = vmatpush3.msra.mxu0 %v954_v40  ;;  %4325 = vmatprep.mubr.msk.f32.mxu0 %vm1306_vm4, %v1309_v42  ;;  %v5264_v42 = vld [vmem:[%s5584_s17] ss:$0 sm:$0xff] }
 0x203   : > { %4625 = vmatprep.subr.bf16.mxu1 %v4862_v14  ;;  %4631 = vmatprep.subr.bf16.mxu0 %v4862_v14 }
 0x204   : > { %4326 = vmatmul.mubr.msk.f32.vlgmr.msra.gmra.mrb[4].mxu0 %vm1306_vm4, %v1310_v43 }
 0x205   : > { %4328 = vmatprep.mubr.msk.f32.mxu0 %vm1306_vm4, %v1311_v7  ;;  %4633 = vmatpush3.bf16.msra.mxu0 %v5204_v8 }
 0x206   : > { %4634 = vmatprep.subr.bf16.mxu0 %v4862_v14 }
 0x208   : > { %4329 = vmatmul.mubr.msk.f32.gmra.mrb[6].mxu0 %vm1306_vm4, %v1312_v16 }
 0x209   : > { %4331 = vmatprep.mubr.msk.f32.mxu0 %vm1306_vm4, %v1313_v17  ;;  %4636 = vmatpush3.bf16.msra.mxu0 %v5227_v22 }
 0x20a   : > { %4637 = vmatprep.subr.bf16.mxu0 %v4862_v14 }
 0x20c   : > { %4332 = vmatmul.mubr.msk.f32.gmra.mrb[8].mxu0 %vm1306_vm4, %v1314_v18 }
 0x20d   : > { %4334 = vmatprep.mubr.msk.f32.mxu0 %vm1306_vm4, %v1315_v21 }
 0x210   : > { %4335 = vmatmul.mubr.msk.f32.gmra.mrb[10].mxu0 %vm1306_vm4, %v1316_v23 }
 0x211   : > { %4361 = vmatprep.mubr.msk.f32.mxu0 %vm4861_vm1, %v4860_v9 }
 0x2d3   : > { %v1220_v46 = vpop.f32.mrb[2].mxu0  ;;  %v1296_v47 = vpop.f32.mrb[2].mxu1 }
 0x2d4   : > { %v1221_v48 = vadd.f32 %v4058_v44, %v1220_v46  ;;  %v1297_v49 = vadd.f32 %v4060_v45, %v1296_v47  ;;  %v4311_v50 = vpop.f32.mrb[3].mxu0  ;;  %v4322_v51 = vpop.f32.mrb[3].mxu1 }
 0x2d6   : > { %1307 = vst.msk [vmem:[%s931_s5] sm:$0xff] %vm1306_vm4, %v1221_v48  ;;  %v1300_v52 = vmul.f32 0.5, %v1297_v49  ;;  %1308 = vst.msk [vmem:[%s935_s9] sm:$0xff] %vm1306_vm4, %v1297_v49 }
 0x2d7   : > { %v4327_v59 = vpop.f32.mrb[4].mxu0 }
 0x2d8   : > { %v1301_v53 = vmul.f32 1.442695, %v1300_v52  ;;  %v1419_v60 = vadd.f32 %v4327_v59, %v5171_v58  ;;  %v1413_v61 = vpop.f32.mrb[5].mxu0 }
 0x2d9   : > { %v1414_v62 = vadd.f32 %v5171_v58, %v1413_v61 }
 0x2da   : > { %4770 = vpow2.f32 %v1301_v53  ;;  %1453 = vst.msk [vmem:[#allocation2 + $0x8] sm:$0xff] %vm1070_vm3, %v1419_v60 }
 0x2db   : > { %1452 = vst.msk [vmem:[#allocation2] sm:$0xff] %vm1070_vm3, %v1414_v62  ;;  %v4330_v29 = vpop.f32.mrb[6].mxu0 }
 0x2dc   : > { %v1429_v30 = vadd.f32 %v4330_v29, %v5171_v58  ;;  %v1423_v31 = vpop.f32.mrb[7].mxu0 }
 0x2dd   : > { %v1424_v32 = vadd.f32 %v5171_v58, %v1423_v31 }
 0x2de   : > { %1455 = vst.msk [vmem:[#allocation2 + $0x18] sm:$0xff] %vm1070_vm3, %v1429_v30 }
 0x2df   : > { %1454 = vst.msk [vmem:[#allocation2 + $0x10] sm:$0xff] %vm1070_vm3, %v1424_v32  ;;  %v4333_v33 = vpop.f32.mrb[8].mxu0 }
 0x2e0   : > { %v1439_v34 = vadd.f32 %v4333_v33, %v5171_v58  ;;  %v1433_v35 = vpop.f32.mrb[9].mxu0 }
 0x2e1   : > { %v1434_v36 = vadd.f32 %v5171_v58, %v1433_v35  ;;  %v1698_v49 = vld [vmem:[#allocation2 + $0x8] sm:$0xff] }
 0x2e2   : > { %v1472_v10 = vld [vmem:[#allocation2] sm:$0xff]  ;;  %1457 = vst.msk [vmem:[#allocation2 + $0x28] sm:$0xff] %vm1070_vm3, %v1439_v34 }
 0x2e3   : > { %1456 = vst.msk [vmem:[#allocation2 + $0x20] sm:$0xff] %vm1070_vm3, %v1434_v36  ;;  %v4336_v37 = vpop.f32.mrb[10].mxu0 }
 0x2e4   : > { %v4771_v55 = vpop.eup %4770  ;;  %v1449_v38 = vadd.f32 %v4336_v37, %v5171_v58  ;;  %v1443_v39 = vpop.f32.mrb[11].mxu0 }
 0x2e5   : > { %v1304_v56 = vmul.f32 %v4771_v55, %v1303_v54  ;;  %v1444_v40 = vadd.f32 %v5171_v58, %v1443_v39  ;;  %v2152_v20 = vld [vmem:[#allocation2 + $0x18] sm:$0xff] }
 0x2e6   : > { %1459 = vst.msk [vmem:[#allocation2 + $0x38] sm:$0xff] %vm1070_vm3, %v1449_v38  ;;  %v1925_v0 = vld [vmem:[#allocation2 + $0x10] sm:$0xff] }
 0x2e7   : > { %v5162_v57 = vadd.f32 %v1304_v56, %v1221_v48  ;;  %1458 = vst.msk [vmem:[#allocation2 + $0x30] sm:$0xff] %vm1070_vm3, %v1444_v40 }
 0x2e9   : > { %4340 = vmatmul.mubr.msk.f32.vlgmr.msra.gmra.mrb[4].mxu1 %vm1306_vm4, %v5162_v57 }
 0x2ea   : > { %4350 = vmatprep.mubr.msk.f32.mxu1 %vm4861_vm1, %v4860_v9  ;;  %4627 = vmatpush3.bf16.msra.mxu1 %v5186_v2  ;;  %v2379_v37 = vld [vmem:[#allocation2 + $0x20] sm:$0xff] }
 0x2eb   : > { %4628 = vmatprep.subr.bf16.mxu1 %v4862_v14 }
 0x2ee   : > { %4630 = vmatpush3.bf16.msra.mxu1 %v5192_v4 }
 0x2ef   : > { %4364 = vmatprep.subr.mxu1 %v4860_v9 }
 0x3bc   : > { %v1542_v11 = vpop.f32.mrb[4].mxu1 }
 0x3bd   : > { %v1543_v12 = vadd.f32 %v1542_v11, %v1472_v10  ;;  %v4341_v13 = vpop.f32.mrb[5].mxu1 }
 0x3bf   : > { %4772 = vtanh.f32 %v1543_v12 }
 0x3c9   : > { %v4773_v15 = vpop.eup %4772 }
 0x3ca   : > { %4351 = vmatmul.mubr.msk.f32.vlgmr.msra.gmra.mrb[6].mxu1 %vm1070_vm3, %v4773_v15 }
 0x3cb   : > { %4365 = vmatpush3.msra.mxu1 %v5130_v41  ;;  %4366 = vmatprep.mubr.msk.f32.mxu1 %vm4861_vm1, %v4860_v9 }
 0x3cc   : > { %4643 = vmatprep.subr.bf16.mxu1 %v4862_v14 }
 0x49d   : > { %v1616_v25 = vpop.f32.mrb[6].mxu1 }
 0x49e   : > { %v1617_v26 = vadd.f32 %v5239_v24, %v1616_v25  ;;  %v4352_v27 = vpop.f32.mrb[7].mxu1 }
 0x4a0   : > { %4774 = vtanh.f32 %v1617_v26 }
 0x4aa   : > { %v4775_v28 = vpop.eup %4774 }
 0x4ab   : > { %4362 = vmatmul.mubr.msk.f32.vlgmr.msra.gmra.mrb[12].mxu0 %vm1070_vm3, %v4775_v28 }
 0x4ac   : > { %4639 = vmatpush3.bf16.msra.mxu0 %v5186_v2  ;;  %4377 = vmatprep.mubr.msk.f32.mxu0 %vm4861_vm1, %v4860_v9 }
 0x4ad   : > { %4640 = vmatprep.subr.bf16.mxu0 %v4862_v14 }
 0x4b0   : > { %4642 = vmatpush3.bf16.msra.mxu0 %v5192_v4 }
 0x4b1   : > { %4391 = vmatprep.subr.mxu0 %v4860_v9 }
 0x57e   : > { %v1690_v43 = vpop.f32.mrb[12].mxu0 }
 0x57f   : > { %v1691_v44 = vadd.f32 %v5264_v42, %v1690_v43  ;;  %v4363_v45 = vpop.f32.mrb[13].mxu0 }
 0x581   : > { %v1694_v46 = vmul.f32 0.05, %v1691_v44 }
 0x583   : > { %v1695_v47 = vadd.f32 %v1694_v46, %v5162_v57 }
 0x585   : > { %1696 = vst.msk [vmem:[#allocation3] sm:$0xff] %vm1306_vm4, %v1695_v47  ;;  %4367 = vmatmul.mubr.msk.f32.vlgmr.msra.gmra.mrb[8].mxu1 %vm1306_vm4, %v1695_v47 }
 0x586   : > { %4645 = vmatpush3.bf16.msra.mxu1 %v5204_v8  ;;  %4388 = vmatprep.mubr.msk.f32.mxu1 %vm4861_vm1, %v4860_v9 }
 0x587   : > { %4646 = vmatprep.subr.bf16.mxu1 %v4862_v14 }
 0x58a   : > { %4648 = vmatpush3.bf16.msra.mxu1 %v5227_v22 }
 0x58b   : > { %4649 = vmatprep.subr.bf16.mxu1 %v4862_v14 }
 0x58c   : > { %v5276_v48 = vld [vmem:[#allocation3] sm:$0xff] }
 0x58d   : > { %3723 = vst.msk [vmem:[%s5279_s1] sm:$0xff] %vm1306_vm4, %v5276_v48 }
 0x658   : > { %v1768_v50 = vpop.f32.mrb[8].mxu1 }
 0x659   : > { %v1769_v51 = vadd.f32 %v1768_v50, %v1698_v49  ;;  %v4368_v52 = vpop.f32.mrb[9].mxu1 }
 0x65b   : > { %4776 = vtanh.f32 %v1769_v51 }
 0x665   : > { %v4777_v53 = vpop.eup %4776 }
 0x666   : > { %4378 = vmatmul.mubr.msk.f32.vlgmr.msra.gmra.mrb[14].mxu0 %vm1070_vm3, %v4777_v53 }
 0x667   : > { %4392 = vmatpush3.msra.mxu0 %v5130_v41  ;;  %4393 = vmatprep.mubr.msk.f32.mxu0 %vm4861_vm1, %v4860_v9 }
 0x668   : > { %4655 = vmatprep.subr.bf16.mxu0 %v4862_v14 }
 0x739   : > { %v1842_v54 = vpop.f32.mrb[14].mxu0 }
 0x73a   : > { %v1843_v55 = vadd.f32 %v5239_v24, %v1842_v54  ;;  %v4379_v56 = vpop.f32.mrb[15].mxu0 }
 0x73c   : > { %4778 = vtanh.f32 %v1843_v55  ;;  %v2606_v55 = vld [vmem:[#allocation2 + $0x28] sm:$0xff] }
 0x746   : > { %v4779_v57 = vpop.eup %4778 }
 0x747   : > { %4389 = vmatmul.mubr.msk.f32.vlgmr.msra.gmra.mrb[10].mxu1 %vm1070_vm3, %v4779_v57 }
 0x748   : > { %4651 = vmatpush3.bf16.msra.mxu1 %v5186_v2  ;;  %4404 = vmatprep.mubr.msk.f32.mxu1 %vm4861_vm1, %v4860_v9 }
 0x749   : > { %4652 = vmatprep.subr.bf16.mxu1 %v4862_v14 }
 0x74c   : > { %4654 = vmatpush3.bf16.msra.mxu1 %v5192_v4 }
 0x74d   : > { %4418 = vmatprep.subr.mxu1 %v4860_v9 }
 0x81a   : > { %v1916_v58 = vpop.f32.mrb[10].mxu1 }
 0x81b   : > { %v1917_v59 = vadd.f32 %v5264_v42, %v1916_v58  ;;  %v4390_v60 = vpop.f32.mrb[11].mxu1 }
 0x81d   : > { %v1920_v61 = vmul.f32 0.05, %v1917_v59 }
 0x81f   : > { %v1921_v62 = vadd.f32 %v1920_v61, %v1695_v47 }
 0x821   : > { %1923 = vst.msk [vmem:[#allocation3 + $0x8] sm:$0xff] %vm1306_vm4, %v1921_v62  ;;  %4394 = vmatmul.mubr.msk.f32.vlgmr.msra.gmra.mrb[16].mxu0 %vm1306_vm4, %v1921_v62 }
 0x822   : > { %4657 = vmatpush3.bf16.msra.mxu0 %v5204_v8  ;;  %4415 = vmatprep.mubr.msk.f32.mxu0 %vm4861_vm1, %v4860_v9 }
 0x823   : > { %4658 = vmatprep.subr.bf16.mxu0 %v4862_v14 }
 0x826   : > { %4660 = vmatpush3.bf16.msra.mxu0 %v5227_v22 }
 0x827   : > { %4661 = vmatprep.subr.bf16.mxu0 %v4862_v14 }
 0x828   : > { %v5306_v63 = vld [vmem:[#allocation3 + $0x8] sm:$0xff] }
 0x829   : > { %3724 = vst.msk [vmem:[%s5279_s1 + $0x8] sm:$0xff] %vm1306_vm4, %v5306_v63 }
 0x8f4   : > { %v1995_v1 = vpop.f32.mrb[16].mxu0 }
 0x8f5   : > { %v1996_v3 = vadd.f32 %v1995_v1, %v1925_v0  ;;  %v4395_v5 = vpop.f32.mrb[17].mxu0 }
 0x8f7   : > { %4780 = vtanh.f32 %v1996_v3 }
 0x901   : > { %v4781_v6 = vpop.eup %4780 }
 0x902   : > { %4405 = vmatmul.mubr.msk.f32.vlgmr.msra.gmra.mrb[12].mxu1 %vm1070_vm3, %v4781_v6 }
 0x903   : > { %4419 = vmatpush3.msra.mxu1 %v5130_v41  ;;  %4420 = vmatprep.mubr.msk.f32.mxu1 %vm4861_vm1, %v4860_v9 }
 0x904   : > { %4667 = vmatprep.subr.bf16.mxu1 %v4862_v14 }
 0x9d5   : > { %v2069_v7 = vpop.f32.mrb[12].mxu1 }
 0x9d6   : > { %v2070_v10 = vadd.f32 %v5239_v24, %v2069_v7  ;;  %v4406_v11 = vpop.f32.mrb[13].mxu1 }
 0x9d7   : > { %v2833_v11 = vld [vmem:[#allocation2 + $0x30] sm:$0xff] }
 0x9d8   : > { %4782 = vtanh.f32 %v2070_v10 }
 0x9e2   : > { %v4783_v12 = vpop.eup %4782 }
 0x9e3   : > { %4416 = vmatmul.mubr.msk.f32.vlgmr.msra.gmra.mrb[18].mxu0 %vm1070_vm3, %v4783_v12 }
 0x9e4   : > { %4663 = vmatpush3.bf16.msra.mxu0 %v5186_v2  ;;  %4431 = vmatprep.mubr.msk.f32.mxu0 %vm4861_vm1, %v4860_v9 }
 0x9e5   : > { %4664 = vmatprep.subr.bf16.mxu0 %v4862_v14 }
 0x9e8   : > { %4666 = vmatpush3.bf16.msra.mxu0 %v5192_v4 }
 0x9e9   : > { %4445 = vmatprep.subr.mxu0 %v4860_v9 }
 0xab6   : > { %v2143_v13 = vpop.f32.mrb[18].mxu0 }
 0xab7   : > { %v2144_v15 = vadd.f32 %v5264_v42, %v2143_v13  ;;  %v4417_v16 = vpop.f32.mrb[19].mxu0 }
 0xab9   : > { %v2147_v17 = vmul.f32 0.05, %v2144_v15 }
 0xabb   : > { %v2148_v18 = vadd.f32 %v2147_v17, %v1921_v62 }
 0xabd   : > { %2150 = vst.msk [vmem:[#allocation3 + $0x10] sm:$0xff] %vm1306_vm4, %v2148_v18  ;;  %4421 = vmatmul.mubr.msk.f32.vlgmr.msra.gmra.mrb[14].mxu1 %vm1306_vm4, %v2148_v18 }
 0xabe   : > { %4669 = vmatpush3.bf16.msra.mxu1 %v5204_v8  ;;  %4442 = vmatprep.mubr.msk.f32.mxu1 %vm4861_vm1, %v4860_v9 }
 0xabf   : > { %4670 = vmatprep.subr.bf16.mxu1 %v4862_v14 }
 0xac2   : > { %4672 = vmatpush3.bf16.msra.mxu1 %v5227_v22 }
 0xac3   : > { %4673 = vmatprep.subr.bf16.mxu1 %v4862_v14 }
 0xac4   : > { %v5333_v19 = vld [vmem:[#allocation3 + $0x10] sm:$0xff] }
 0xac5   : > { %3725 = vst.msk [vmem:[%s5279_s1 + $0x10] sm:$0xff] %vm1306_vm4, %v5333_v19 }
 0xb90   : > { %v2222_v21 = vpop.f32.mrb[14].mxu1 }
 0xb91   : > { %v2223_v23 = vadd.f32 %v2222_v21, %v2152_v20  ;;  %v4422_v25 = vpop.f32.mrb[15].mxu1 }
 0xb93   : > { %4784 = vtanh.f32 %v2223_v23 }
 0xb9d   : > { %v4785_v26 = vpop.eup %4784 }
 0xb9e   : > { %4432 = vmatmul.mubr.msk.f32.vlgmr.msra.gmra.mrb[20].mxu0 %vm1070_vm3, %v4785_v26 }
 0xb9f   : > { %4446 = vmatpush3.msra.mxu0 %v5130_v41  ;;  %4447 = vmatprep.mubr.msk.f32.mxu0 %vm4861_vm1, %v4860_v9 }
 0xba0   : > { %4679 = vmatprep.subr.bf16.mxu0 %v4862_v14 }
 0xc71   : > { %v2296_v27 = vpop.f32.mrb[20].mxu0 }
 0xc72   : > { %v2297_v28 = vadd.f32 %v5239_v24, %v2296_v27  ;;  %v4433_v29 = vpop.f32.mrb[21].mxu0 }
 0xc74   : > { %4786 = vtanh.f32 %v2297_v28  ;;  %v3060_v28 = vld [vmem:[#allocation2 + $0x38] sm:$0xff] }
 0xc7e   : > { %v4787_v30 = vpop.eup %4786 }
 0xc7f   : > { %4443 = vmatmul.mubr.msk.f32.vlgmr.msra.gmra.mrb[16].mxu1 %vm1070_vm3, %v4787_v30 }
 0xc80   : > { %4675 = vmatpush3.bf16.msra.mxu1 %v5186_v2  ;;  %4458 = vmatprep.mubr.msk.f32.mxu1 %vm4861_vm1, %v4860_v9 }
 0xc81   : > { %4676 = vmatprep.subr.bf16.mxu1 %v4862_v14 }
 0xc84   : > { %4678 = vmatpush3.bf16.msra.mxu1 %v5192_v4 }
 0xc85   : > { %4472 = vmatprep.subr.mxu1 %v4860_v9 }
 0xd52   : > { %v2370_v31 = vpop.f32.mrb[16].mxu1 }
 0xd53   : > { %v2371_v32 = vadd.f32 %v5264_v42, %v2370_v31  ;;  %v4444_v33 = vpop.f32.mrb[17].mxu1 }
 0xd55   : > { %v2374_v34 = vmul.f32 0.05, %v2371_v32 }
 0xd57   : > { %v2375_v35 = vadd.f32 %v2374_v34, %v2148_v18 }
 0xd59   : > { %2377 = vst.msk [vmem:[#allocation3 + $0x18] sm:$0xff] %vm1306_vm4, %v2375_v35  ;;  %4448 = vmatmul.mubr.msk.f32.vlgmr.msra.gmra.mrb[22].mxu0 %vm1306_vm4, %v2375_v35 }
 0xd5a   : > { %4681 = vmatpush3.bf16.msra.mxu0 %v5204_v8  ;;  %4469 = vmatprep.mubr.msk.f32.mxu0 %vm4861_vm1, %v4860_v9 }
 0xd5b   : > { %4682 = vmatprep.subr.bf16.mxu0 %v4862_v14 }
 0xd5e   : > { %4684 = vmatpush3.bf16.msra.mxu0 %v5227_v22 }
 0xd5f   : > { %4685 = vmatprep.subr.bf16.mxu0 %v4862_v14 }
 0xd60   : > { %v5360_v36 = vld [vmem:[#allocation3 + $0x18] sm:$0xff] }
 0xd61   : > { %3726 = vst.msk [vmem:[%s5279_s1 + $0x18] sm:$0xff] %vm1306_vm4, %v5360_v36 }
 0xe2c   : > { %v2449_v38 = vpop.f32.mrb[22].mxu0 }
 0xe2d   : > { %v2450_v39 = vadd.f32 %v2449_v38, %v2379_v37  ;;  %v4449_v40 = vpop.f32.mrb[23].mxu0  ;;  %v971_v37 = vld [vmem:[%s5587_s20 + $0x18] sm:$0xff] }
 0xe2f   : > { %4788 = vtanh.f32 %v2450_v39  ;;  %v4097_v39 = vld [vmem:[%s5586_s19] ss:$0 sm:$0xff] }
 0xe39   : > { %v4789_v43 = vpop.eup %4788 }
 0xe3a   : > { %4459 = vmatmul.mubr.msk.f32.vlgmr.msra.gmra.mrb[18].mxu1 %vm1070_vm3, %v4789_v43 }
 0xe3b   : > { %4473 = vmatpush3.msra.mxu1 %v5130_v41  ;;  %4474 = vmatprep.mubr.msk.f32.mxu1 %vm4861_vm1, %v4860_v9 }
 0xe3c   : > { %4691 = vmatprep.subr.bf16.mxu1 %v4862_v14 }
 0xf0d   : > { %v2523_v44 = vpop.f32.mrb[18].mxu1 }
 0xf0e   : > { %v2524_v45 = vadd.f32 %v5239_v24, %v2523_v44  ;;  %v4460_v46 = vpop.f32.mrb[19].mxu1 }
 0xf10   : > { %4790 = vtanh.f32 %v2524_v45 }
 0xf1a   : > { %v4791_v47 = vpop.eup %4790 }
 0xf1b   : > { %4470 = vmatmul.mubr.msk.f32.vlgmr.msra.gmra.mrb[24].mxu0 %vm1070_vm3, %v4791_v47 }
 0xf1c   : > { %4687 = vmatpush3.bf16.msra.mxu0 %v5186_v2  ;;  %4485 = vmatprep.mubr.msk.f32.mxu0 %vm4861_vm1, %v4860_v9 }
 0xf1d   : > { %4688 = vmatprep.subr.bf16.mxu0 %v4862_v14 }
 0xf20   : > { %4690 = vmatpush3.bf16.msra.mxu0 %v5192_v4 }
 0xf21   : > { %4499 = vmatprep.subr.mxu0 %v4860_v9 }
 0xfee   : > { %v2597_v49 = vpop.f32.mrb[24].mxu0 }
 0xfef   : > { %v2598_v50 = vadd.f32 %v5264_v42, %v2597_v49  ;;  %v4471_v51 = vpop.f32.mrb[25].mxu0 }
 0xff1   : > { %v2601_v52 = vmul.f32 0.05, %v2598_v50 }
 0xff3   : > { %v2602_v53 = vadd.f32 %v2601_v52, %v2375_v35 }
 0xff5   : > { %2604 = vst.msk [vmem:[#allocation3 + $0x20] sm:$0xff] %vm1306_vm4, %v2602_v53  ;;  %4475 = vmatmul.mubr.msk.f32.vlgmr.msra.gmra.mrb[20].mxu1 %vm1306_vm4, %v2602_v53 }
 0xff6   : > { %4693 = vmatpush3.bf16.msra.mxu1 %v5204_v8  ;;  %4496 = vmatprep.mubr.msk.f32.mxu1 %vm4861_vm1, %v4860_v9 }
 0xff7   : > { %4694 = vmatprep.subr.bf16.mxu1 %v4862_v14 }
 0xffa   : > { %4696 = vmatpush3.bf16.msra.mxu1 %v5227_v22 }
 0xffb   : > { %4697 = vmatprep.subr.bf16.mxu1 %v4862_v14 }
 0xffc   : > { %v5387_v54 = vld [vmem:[#allocation3 + $0x20] sm:$0xff] }
 0xffd   : > { %3727 = vst.msk [vmem:[%s5279_s1 + $0x20] sm:$0xff] %vm1306_vm4, %v5387_v54 }
0x10c8   : > { %v2676_v56 = vpop.f32.mrb[20].mxu1 }
0x10c9   : > { %v2677_v57 = vadd.f32 %v2676_v56, %v2606_v55  ;;  %v4476_v58 = vpop.f32.mrb[21].mxu1 }
0x10cb   : > { %4792 = vtanh.f32 %v2677_v57 }
0x10d5   : > { %v4793_v59 = vpop.eup %4792 }
0x10d6   : > { %4486 = vmatmul.mubr.msk.f32.vlgmr.msra.gmra.mrb[26].mxu0 %vm1070_vm3, %v4793_v59 }
0x10d7   : > { %4500 = vmatpush3.msra.mxu0 %v5130_v41  ;;  %4501 = vmatprep.mubr.msk.f32.mxu0 %vm4861_vm1, %v4860_v9 }
0x10d8   : > { %4703 = vmatprep.subr.bf16.mxu0 %v4862_v14 }
0x11a9   : > { %v2750_v60 = vpop.f32.mrb[26].mxu0 }
0x11aa   : > { %v2751_v61 = vadd.f32 %v5239_v24, %v2750_v60  ;;  %v4487_v62 = vpop.f32.mrb[27].mxu0 }
0x11ab   : > { %v973_v62 = vld [vmem:[%s5589_s22] sm:$0xff] }
0x11ac   : > { %4794 = vtanh.f32 %v2751_v61 }
0x11b6   : > { %v4795_v0 = vpop.eup %4794 }
0x11b7   : > { %4497 = vmatmul.mubr.msk.f32.vlgmr.msra.gmra.mrb[22].mxu1 %vm1070_vm3, %v4795_v0  ;;  %v974_v0 = vld [vmem:[%s5589_s22 + $0x8] sm:$0xff] }
0x11b8   : > { %4699 = vmatpush3.bf16.msra.mxu1 %v5186_v2  ;;  %4512 = vmatprep.mubr.msk.f32.mxu1 %vm4861_vm1, %v4860_v9 }
0x11b9   : > { %4700 = vmatprep.subr.bf16.mxu1 %v4862_v14 }
0x11bc   : > { %4702 = vmatpush3.bf16.msra.mxu1 %v5192_v4 }
0x11bd   : > { %4526 = vmatprep.subr.mxu1 %v4860_v9 }
0x128a   : > { %v2824_v1 = vpop.f32.mrb[22].mxu1 }
0x128b   : > { %v2825_v3 = vadd.f32 %v5264_v42, %v2824_v1  ;;  %v4498_v5 = vpop.f32.mrb[23].mxu1  ;;  %v4729_v1 = vpack.c.bf16 %v974_v0, %v973_v62 }
0x128c   : > { %v976_v5 = vld [vmem:[%s5589_s22 + $0x18] sm:$0xff] }
0x128d   : > { %v2828_v6 = vmul.f32 0.05, %v2825_v3  ;;  %v975_v3 = vld [vmem:[%s5589_s22 + $0x10] sm:$0xff] }
0x128f   : > { %v2829_v7 = vadd.f32 %v2828_v6, %v2602_v53  ;;  %v4733_v6 = vpack.c.bf16 %v976_v5, %v975_v3 }
0x1291   : > { %2831 = vst.msk [vmem:[#allocation3 + $0x28] sm:$0xff] %vm1306_vm4, %v2829_v7  ;;  %4502 = vmatmul.mubr.msk.f32.vlgmr.msra.gmra.mrb[28].mxu0 %vm1306_vm4, %v2829_v7 }
0x1292   : > { %4705 = vmatpush3.bf16.msra.mxu0 %v5204_v8  ;;  %4523 = vmatprep.mubr.msk.f32.mxu0 %vm4861_vm1, %v4860_v9 }
0x1293   : > { %4706 = vmatprep.subr.bf16.mxu0 %v4862_v14 }
0x1296   : > { %4708 = vmatpush3.bf16.msra.mxu0 %v5227_v22 }
0x1297   : > { %4709 = vmatprep.subr.bf16.mxu0 %v4862_v14 }
0x1298   : > { %v3291_v10 = vld [vmem:[#allocation3 + $0x28] sm:$0xff] }
0x1299   : > { %3728 = vst.msk [vmem:[%s5279_s1 + $0x28] sm:$0xff] %vm1306_vm4, %v3291_v10 }
0x1364   : > { %v2903_v12 = vpop.f32.mrb[28].mxu0 }
0x1365   : > { %v2904_v13 = vadd.f32 %v2903_v12, %v2833_v11  ;;  %v4503_v15 = vpop.f32.mrb[29].mxu0 }
0x1367   : > { %4796 = vtanh.f32 %v2904_v13  ;;  %v4106_v13 = vld [vmem:[%s5588_s21] ss:$0 sm:$0xff] }
0x1371   : > { %v4797_v16 = vpop.eup %4796 }
0x1372   : > { %4513 = vmatmul.mubr.msk.f32.vlgmr.msra.gmra.mrb[24].mxu1 %vm1070_vm3, %v4797_v16 }
0x1373   : > { %4527 = vmatpush3.msra.mxu1 %v5130_v41  ;;  %4528 = vmatprep.mubr.msk.f32.mxu1 %vm4861_vm1, %v4860_v9 }
0x1374   : > { %4715 = vmatprep.subr.bf16.mxu1 %v4862_v14 }
0x1445   : > { %v2977_v17 = vpop.f32.mrb[24].mxu1 }
0x1446   : > { %v2978_v18 = vadd.f32 %v5239_v24, %v2977_v17  ;;  %v4514_v20 = vpop.f32.mrb[25].mxu1 }
0x1448   : > { %4798 = vtanh.f32 %v2978_v18 }
0x1452   : > { %v4799_v21 = vpop.eup %4798 }
0x1453   : > { %4524 = vmatmul.mubr.msk.f32.vlgmr.msra.gmra.mrb[30].mxu0 %vm1070_vm3, %v4799_v21 }
0x1454   : > { %4711 = vmatpush3.bf16.msra.mxu0 %v5186_v2  ;;  %4539 = vmatprep.mubr.msk.f32.mxu0 %vm4861_vm1, %v4860_v9 }
0x1455   : > { %4712 = vmatprep.subr.bf16.mxu0 %v4862_v14 }
0x1458   : > { %4714 = vmatpush3.bf16.msra.mxu0 %v5192_v4  ;;  %v966_v4 = vld [vmem:[%s5585_s18] sm:$0xff] }
0x1459   : > { %4553 = vmatprep.subr.mxu0 %v966_v4 }
0x1526   : > { %v3051_v41 = vpop.f32.mrb[30].mxu0 }
0x1527   : > { %v3052_v23 = vadd.f32 %v5264_v42, %v3051_v41  ;;  %v4525_v25 = vpop.f32.mrb[31].mxu0 }
0x1529   : > { %v3055_v26 = vmul.f32 0.05, %v3052_v23 }
0x152b   : > { %v3056_v27 = vadd.f32 %v3055_v26, %v2829_v7 }
0x152d   : > { %3058 = vst.msk [vmem:[#allocation3 + $0x30] sm:$0xff] %vm1306_vm4, %v3056_v27  ;;  %4529 = vmatmul.mubr.msk.f32.vlgmr.msra.gmra.mrb[26].mxu1 %vm1306_vm4, %v3056_v27 }
0x152e   : > { %4717 = vmatpush3.bf16.msra.mxu1 %v5204_v8  ;;  %4550 = vmatprep.mubr.msk.f32.mxu1 %vm4861_vm1, %v4860_v9 }
0x152f   : > { %4718 = vmatprep.subr.bf16.mxu1 %v4862_v14 }
0x1532   : > { %4720 = vmatpush3.bf16.msra.mxu1 %v5227_v22 }
0x1533   : > { %4737 = vmatprep.subr.mxu1 %v966_v4 }
0x1534   : > { %v3292_v2 = vld [vmem:[#allocation3 + $0x30] sm:$0xff] }
0x1535   : > { %3729 = vst.msk [vmem:[%s5279_s1 + $0x30] sm:$0xff] %vm1306_vm4, %v3292_v2 }
0x1600   : > { %v3130_v29 = vpop.f32.mrb[26].mxu1 }
0x1601   : > { %v3131_v30 = vadd.f32 %v3130_v29, %v3060_v28  ;;  %v4530_v8 = vpop.f32.mrb[27].mxu1 }
0x1603   : > { %4800 = vtanh.f32 %v3131_v30 }
0x160d   : > { %v4801_v31 = vpop.eup %4800 }
0x160e   : > { %4540 = vmatmul.mubr.msk.f32.vlgmr.msra.gmra.mrb[32].mxu0 %vm1070_vm3, %v4801_v31 }
0x160f   : > { %4555 = vmatprep.mubr.msk.f32.mxu0 %vm1306_vm4, %v5276_v48  ;;  %4554 = vmatpush3.msra.mxu0 %v966_v4 }
0x1610   : > { %4730 = vmatprep.subr.bf16.mxu0 %v4729_v1 }
0x1612   : > { %4556 = vmatmul.mubr.msk.f32.vlgmr.msra.gmra.mrb[34].mxu0 %vm1306_vm4, %v5306_v63  ;;  %v969_v63 = vld [vmem:[%s5587_s20 + $0x8] sm:$0xff] }
0x1613   : > { %4558 = vmatprep.mubr.msk.f32.mxu0 %vm1306_vm4, %v5333_v19  ;;  %4732 = vmatpush3.bf16.msra.mxu0 %v4729_v1 }
0x1614   : > { %4734 = vmatprep.subr.bf16.mxu0 %v4733_v6 }
0x1616   : > { %4559 = vmatmul.mubr.msk.f32.gmra.mrb[36].mxu0 %vm1306_vm4, %v5360_v36  ;;  %v970_v36 = vld [vmem:[%s5587_s20 + $0x10] sm:$0xff] }
0x1617   : > { %v4725_v38 = vpack.c.bf16 %v971_v37, %v970_v36  ;;  %4736 = vmatpush3.bf16.msra.mxu0 %v4733_v6 }
0x16e1   : > { %v3204_v9 = vpop.f32.mrb[32].mxu0 }
0x16e2   : > { %v3205_v14 = vadd.f32 %v5239_v24, %v3204_v9  ;;  %v4541_v22 = vpop.f32.mrb[33].mxu0  ;;  %v968_v24 = vld [vmem:[%s5587_s20] sm:$0xff] }
0x16e3   : > { %v4721_v19 = vpack.c.bf16 %v969_v63, %v968_v24 }
0x16e4   : > { %4802 = vtanh.f32 %v3205_v14 }
0x16e5   : > { %v4557_v32 = vpop.f32.mrb[34].mxu0 }
0x16e6   : > { %v3390_v33 = vpop.f32.mrb[35].mxu0  ;;  %v3396_v47 = vadd.f32 %v4557_v32, %v4097_v39 }
0x16e7   : > { %v3391_v43 = vadd.f32 %v4097_v39, %v3390_v33 }
0x16e9   : > { %v4560_v34 = vpop.f32.mrb[36].mxu0  ;;  %4804 = vtanh.f32 %v3391_v43 }
0x16ea   : > { %v3400_v35 = vpop.f32.mrb[37].mxu0  ;;  %4806 = vtanh.f32 %v3396_v47  ;;  %v3406_v53 = vadd.f32 %v4560_v34, %v4097_v39 }
0x16eb   : > { %v3401_v50 = vadd.f32 %v4097_v39, %v3400_v35  ;;  %v4115_v35 = vld [vmem:[%s5590_s23] ss:$0 sm:$0xff] }
0x16ed   : > { %4808 = vtanh.f32 %v3401_v50 }
0x16ee   : > { %v4803_v48 = vpop.eup %4802  ;;  %4810 = vtanh.f32 %v3406_v53 }
0x16ef   : > { %4551 = vmatmul.mubr.msk.f32.vlgmr.msra.gmra.mrb[28].mxu1 %vm1070_vm3, %v4803_v48 }
0x16f0   : > { %4561 = vmatprep.mubr.msk.f32.mxu1 %vm1306_vm4, %v5387_v54  ;;  %4738 = vmatpush3.msra.mxu1 %v966_v4 }
0x16f1   : > { %4722 = vmatprep.subr.bf16.mxu1 %v4721_v19 }
0x16f3   : > { %4562 = vmatmul.mubr.msk.f32.vlgmr.msra.gmra.mrb[30].mxu1 %vm1306_vm4, %v3291_v10 }
0x16f4   : > { %4564 = vmatprep.mubr.msk.f32.mxu1 %vm1306_vm4, %v3292_v2  ;;  %4724 = vmatpush3.bf16.msra.mxu1 %v4721_v19 }
0x16f5   : > { %4726 = vmatprep.subr.bf16.mxu1 %v4725_v38 }
0x16f8   : > { %4728 = vmatpush3.bf16.msra.mxu1 %v4725_v38 }
0x17c2   : > { %v3278_v40 = vpop.f32.mrb[28].mxu1 }
0x17c3   : > { %v3279_v44 = vadd.f32 %v5264_v42, %v3278_v40  ;;  %v4552_v45 = vpop.f32.mrb[29].mxu1  ;;  %v4805_v42 = vpop.eup %4804 }
0x17c4   : > { %v4807_v57 = vpop.eup %4806 }
0x17c5   : > { %v3282_v46 = vmul.f32 0.05, %v3279_v44  ;;  %v4809_v58 = vpop.eup %4808 }
0x17c6   : > { %v4563_v49 = vpop.f32.mrb[30].mxu1  ;;  %v4811_v59 = vpop.eup %4810 }
0x17c7   : > { %v3283_v51 = vadd.f32 %v3282_v46, %v3056_v27  ;;  %v3410_v52 = vpop.f32.mrb[31].mxu1  ;;  %v3416_v55 = vadd.f32 %v4563_v49, %v4097_v39 }
0x17c8   : > { %v3411_v54 = vadd.f32 %v4097_v39, %v3410_v52 }
0x17c9   : > { %3285 = vst.msk [vmem:[#allocation3 + $0x38] sm:$0xff] %vm1306_vm4, %v3283_v51 }
0x17ca   : > { %4812 = vtanh.f32 %v3411_v54 }
0x17cb   : > { %4814 = vtanh.f32 %v3416_v55 }
0x17d0   : > { %v3293_v56 = vld [vmem:[#allocation3 + $0x38] sm:$0xff] }
0x17d1   : > { %4565 = vmatmul.mubr.msk.f32.gmra.mrb[32].mxu1 %vm1306_vm4, %v3293_v56  ;;  %3730 = vst.msk [vmem:[%s5279_s1 + $0x38] sm:$0xff] %vm1306_vm4, %v3293_v56 }
0x17d2   : > { %4575 = vmatprep.mubr.msk.f32.mxu1 %vm1070_vm3, %v4805_v42 }
0x17d4   : > { %v4813_v60 = vpop.eup %4812 }
0x17d5   : > { %4576 = vmatmul.mubr.msk.f32.vlgmr.msra.gmra.mrb[34].mxu1 %vm1070_vm3, %v4807_v57  ;;  %v4815_v61 = vpop.eup %4814 }
0x17d6   : > { %4578 = vmatprep.mubr.msk.f32.mxu1 %vm1070_vm3, %v4809_v58 }
0x17d9   : > { %4579 = vmatmul.mubr.msk.f32.gmra.mrb[36].mxu1 %vm1070_vm3, %v4811_v59 }
0x17da   : > { %4581 = vmatprep.mubr.msk.f32.mxu1 %vm1070_vm3, %v4813_v60 }
0x17dd   : > { %4582 = vmatmul.mubr.msk.f32.gmra.mrb[38].mxu1 %vm1070_vm3, %v4815_v61 }
0x18a4   : > { %v4566_v7 = vpop.f32.mrb[32].mxu1 }
0x18a5   : > { %v3426_v10 = vadd.f32 %v4566_v7, %v4097_v39  ;;  %v3420_v11 = vpop.f32.mrb[33].mxu1 }
0x18a6   : > { %v3421_v12 = vadd.f32 %v4097_v39, %v3420_v11 }
0x18a8   : > { %4816 = vtanh.f32 %v3421_v12  ;;  %v4577_v15 = vpop.f32.mrb[34].mxu1 }
0x18a9   : > { %4818 = vtanh.f32 %v3426_v10  ;;  %v3539_v16 = vadd.f32 %v4577_v15, %v4106_v13  ;;  %v3533_v17 = vpop.f32.mrb[35].mxu1 }
0x18aa   : > { %v3534_v18 = vadd.f32 %v4106_v13, %v3533_v17 }
0x18ac   : > { %4820 = vtanh.f32 %v3534_v18  ;;  %v4580_v20 = vpop.f32.mrb[36].mxu1 }
0x18ad   : > { %4822 = vtanh.f32 %v3539_v16  ;;  %v3549_v21 = vadd.f32 %v4580_v20, %v4106_v13  ;;  %v3543_v41 = vpop.f32.mrb[37].mxu1 }
0x18ae   : > { %v3544_v23 = vadd.f32 %v4106_v13, %v3543_v41 }
0x18b0   : > { %4824 = vtanh.f32 %v3544_v23  ;;  %v4583_v25 = vpop.f32.mrb[38].mxu1 }
0x18b1   : > { %4826 = vtanh.f32 %v3549_v21  ;;  %v3559_v26 = vadd.f32 %v4583_v25, %v4106_v13  ;;  %v3553_v27 = vpop.f32.mrb[39].mxu1 }
0x18b2   : > { %v4817_v2 = vpop.eup %4816  ;;  %v3554_v4 = vadd.f32 %v4106_v13, %v3553_v27 }
0x18b3   : > { %v4819_v28 = vpop.eup %4818  ;;  %4584 = vmatprep.mubr.msk.f32.mxu1 %vm1070_vm3, %v4817_v2 }
0x18b4   : > { %4828 = vtanh.f32 %v3554_v4  ;;  %4585 = vmatmul.mubr.msk.f32.gmra.mrb[40].mxu1 %vm1070_vm3, %v4819_v28 }
0x18b5   : > { %4830 = vtanh.f32 %v3559_v26 }
0x18b6   : > { %v4821_v29 = vpop.eup %4820 }
0x18b7   : > { %v4823_v30 = vpop.eup %4822  ;;  %4595 = vmatprep.mubr.msk.f32.mxu0 %vm1070_vm3, %v4821_v29 }
0x18b8   : > { %4596 = vmatmul.mubr.msk.f32.vlgmr.msra.gmra.mrb[38].mxu0 %vm1070_vm3, %v4823_v30 }
0x18ba   : > { %v4825_v8 = vpop.eup %4824 }
0x18bb   : > { %v4827_v31 = vpop.eup %4826  ;;  %4598 = vmatprep.mubr.msk.f32.mxu0 %vm1070_vm3, %v4825_v8 }
0x18bc   : > { %4599 = vmatmul.mubr.msk.f32.gmra.mrb[40].mxu0 %vm1070_vm3, %v4827_v31 }
0x18be   : > { %v4829_v9 = vpop.eup %4828 }
0x18bf   : > { %v4831_v14 = vpop.eup %4830  ;;  %4601 = vmatprep.mubr.msk.f32.mxu0 %vm1070_vm3, %v4829_v9 }
0x18c0   : > { %4602 = vmatmul.mubr.msk.f32.gmra.mrb[42].mxu0 %vm1070_vm3, %v4831_v14 }
0x1987   : > { %v4586_v22 = vpop.f32.mrb[40].mxu1 }
0x1988   : > { %v3569_v32 = vadd.f32 %v4586_v22, %v4106_v13  ;;  %v3563_v33 = vpop.f32.mrb[41].mxu1 }
0x1989   : > { %v3564_v34 = vadd.f32 %v4106_v13, %v3563_v33 }
0x198b   : > { %4832 = vtanh.f32 %v3564_v34  ;;  %v4597_v48 = vpop.f32.mrb[38].mxu0 }
0x198c   : > { %4834 = vtanh.f32 %v3569_v32  ;;  %v3682_v24 = vadd.f32 %v4597_v48, %v4115_v35  ;;  %v3676_v63 = vpop.f32.mrb[39].mxu0 }
0x198d   : > { %v3677_v19 = vadd.f32 %v4115_v35, %v3676_v63 }
0x198e   : > { %3716 = vst.msk [vmem:[%s5509_s11 + $0x8] sm:$0xff] %vm985_vm2, %v3682_v24 }
0x198f   : > { %3715 = vst.msk [vmem:[%s5509_s11] sm:$0xff] %vm985_vm2, %v3677_v19  ;;  %v4600_v36 = vpop.f32.mrb[40].mxu0 }
0x1990   : > { %v3692_v37 = vadd.f32 %v4600_v36, %v4115_v35  ;;  %v3686_v38 = vpop.f32.mrb[41].mxu0 }
0x1991   : > { %v3687_v39 = vadd.f32 %v4115_v35, %v3686_v38 }
0x1992   : > { %3718 = vst.msk [vmem:[%s5509_s11 + $0x18] sm:$0xff] %vm985_vm2, %v3692_v37 }
0x1993   : > { %3717 = vst.msk [vmem:[%s5509_s11 + $0x10] sm:$0xff] %vm985_vm2, %v3687_v39  ;;  %v4603_v40 = vpop.f32.mrb[42].mxu0 }
0x1994   : > { %v3702_v43 = vadd.f32 %v4603_v40, %v4115_v35  ;;  %v3696_v44 = vpop.f32.mrb[43].mxu0 }
0x1995   : > { %v4833_v45 = vpop.eup %4832  ;;  %v3697_v46 = vadd.f32 %v4115_v35, %v3696_v44  ;;  %v3795_v54 = vld [vmem:[%s5509_s11 + $0x8] sm:$0xff] (%p5034_p5) }
0x1996   : > { %v4835_v47 = vpop.eup %4834  ;;  %3720 = vst.msk [vmem:[%s5509_s11 + $0x28] sm:$0xff] %vm985_vm2, %v3702_v43  ;;  %4604 = vmatprep.mubr.msk.f32.mxu0 %vm1070_vm3, %v4833_v45  ;;  %v3793_v53 = vld [vmem:[%s5509_s11] sm:$0xff] (%p5034_p5)  ;;  %3796 = vst [vmem:[%s3751_s25 + $0x10] sm:$0xff] (%p5034_p5), %v3795_v54 }
0x1997   : > { %3719 = vst.msk [vmem:[%s5509_s11 + $0x20] sm:$0xff] %vm985_vm2, %v3697_v46  ;;  %4605 = vmatmul.mubr.msk.f32.gmra.mrb[44].mxu0 %vm1070_vm3, %v4835_v47  ;;  %3794 = vst [vmem:[%s3751_s25] sm:$0xff] (%p5034_p5), %v3793_v53 }
0x1999   : > { %v3799_v56 = vld [vmem:[%s5509_s11 + $0x18] sm:$0xff] (%p5034_p5) }
0x199a   : > { %v3797_v55 = vld [vmem:[%s5509_s11 + $0x10] sm:$0xff] (%p5034_p5)  ;;  %3800 = vst [vmem:[%s3751_s25 + $0x30] sm:$0xff] (%p5034_p5), %v3799_v56 }
0x199b   : > { %3798 = vst [vmem:[%s3751_s25 + $0x20] sm:$0xff] (%p5034_p5), %v3797_v55 }
0x199d   : > { %v3803_v57 = vld [vmem:[%s5509_s11 + $0x28] sm:$0xff] (%p5034_p5) }
0x199e   : > { %v3801_v42 = vld [vmem:[%s5509_s11 + $0x20] sm:$0xff] (%p5034_p5)  ;;  %3804 = vst [vmem:[%s3751_s25 + $0x50] sm:$0xff] (%p5034_p5), %v3803_v57 }
0x199f   : > { %3802 = vst [vmem:[%s3751_s25 + $0x40] sm:$0xff] (%p5034_p5), %v3801_v42 }
0x1a68   : > { %3749 = sbr.rel (!%p5034_p5) target bundleno = 6775 (0x1a77), region = 158 }
0x1a6a   : > { %v4606_v49 = vpop.f32.mrb[44].mxu0 }
0x1a6b   : > { %v3712_v50 = vadd.f32 %v4606_v49, %v4115_v35  ;;  %v3706_v51 = vpop.f32.mrb[45].mxu0 }
0x1a6c   : > { %v3707_v52 = vadd.f32 %v4115_v35, %v3706_v51 }
0x1a6d   : > { %3722 = vst.msk [vmem:[%s5509_s11 + $0x38] sm:$0xff] %vm985_vm2, %v3712_v50 }
0x1a6e   : > { %3721 = vst.msk [vmem:[%s5509_s11 + $0x30] sm:$0xff] %vm985_vm2, %v3707_v52 }
0x1a74   : > { %v3807_v59 = vld [vmem:[%s5509_s11 + $0x38] sm:$0xff] }
0x1a75   : > { %v3805_v58 = vld [vmem:[%s5509_s11 + $0x30] sm:$0xff]  ;;  %3808 = vst [vmem:[%s3751_s25 + $0x70] sm:$0xff] %v3807_v59 }
0x1a76   : > { %3806 = vst [vmem:[%s3751_s25 + $0x60] sm:$0xff] %v3805_v58 }
0x1a77 PF: > { %3814 = sbr.rel (!%p5034_p5) target bundleno = 6787 (0x1a83), region = 196  ;;  %s5638_s30 = sld [smem:[#allocation8_spill]] (%p5034_p5)  ;;  %v3858_v60 = vld [vmem:[%s5279_s1] sm:$0xff] (%p5034_p5)  ;;  %v3860_v61 = vld [vmem:[%s5279_s1 + $0x8] sm:$0xff] (%p5034_p5)  ;;  %v3862_v62 = vld [vmem:[%s5279_s1 + $0x10] sm:$0xff] (%p5034_p5) }
0x1a78   : > { %s5639_s4 = sld [smem:[#allocation24_spill]] (%p5034_p5)  ;;  %v3864_v0 = vld [vmem:[%s5279_s1 + $0x18] sm:$0xff] (%p5034_p5)  ;;  %v3866_v1 = vld [vmem:[%s5279_s1 + $0x20] sm:$0xff] (%p5034_p5)  ;;  %v3868_v3 = vld [vmem:[%s5279_s1 + $0x28] sm:$0xff] (%p5034_p5) }
0x1a79   : > { %v3870_v5 = vld [vmem:[%s5279_s1 + $0x30] sm:$0xff] (%p5034_p5)  ;;  %v3872_v6 = vld [vmem:[%s5279_s1 + $0x38] sm:$0xff] (%p5034_p5) }
0x1a7d   : > { %s4127_s6 = sshll.u32 (%p5034_p5), %s5638_s30, 3 }
0x1a7e   : > { %s3816_s0 = scalar_lea.vmem %s5639_s4, %s4127_s6 }
0x1a7f   : > { %3859 = vst [vmem:[%s3816_s0] sm:$0xff] %v3858_v60  ;;  %3861 = vst [vmem:[%s3816_s0 + $0x10] sm:$0xff] %v3860_v61 }
0x1a80   : > { %3863 = vst [vmem:[%s3816_s0 + $0x20] sm:$0xff] %v3862_v62  ;;  %3865 = vst [vmem:[%s3816_s0 + $0x30] sm:$0xff] %v3864_v0 }
0x1a81   : > { %3867 = vst [vmem:[%s3816_s0 + $0x40] sm:$0xff] %v3866_v1  ;;  %3869 = vst [vmem:[%s3816_s0 + $0x50] sm:$0xff] %v3868_v3 }
0x1a82   : > { %3871 = vst [vmem:[%s3816_s0 + $0x60] sm:$0xff] %v3870_v5  ;;  %3873 = vst [vmem:[%s3816_s0 + $0x70] sm:$0xff] %v3872_v6 }
0x1a83 PF: > { %s5640_s8 = sld [smem:[#allocation9_spill]]  ;;  %s5641_s7 = sld [smem:[#allocation7_spill]] }
0x1a84   : > { %s5642_s4 = sld [smem:[#allocation10_spill]] }
0x1a89   : > { %p35_p11 = scmp.ge.s32.totalorder %s5640_s8, 4  }
0x1a8b   :  { %37 = sbr.rel (!%p35_p11) target bundleno = 17 (0x11), region = 321 }

</bundles_post_ra>
